<compile_context>
chip_gen: v7x
topology: tpu7x:2x2x1
jax: 0.10.0
libtpu: 0.0.40
codegen_flags: <defaults>
</compile_context>

<pallas_src>
import functools

import jax
import jax.numpy as jnp
from jax.experimental import pallas as pl
from jax.experimental.pallas import tpu as pltpu

IN_F = 2
OUT_F = 2
HIDDEN = 2000
HIDDEN_PAD = 2048          # hidden dim padded to a multiple of 128 (lane width)
OUT_PAD = 128              # lane-dense output block
TN = 512                   # W2 output-column tile: (2048, 512) bf16 = 2 MiB per buffer
N_TILES = HIDDEN_PAD // TN


def _mlp_kernel(x_ref, w1_ref, b1_ref, w2_ref, b2_ref, w3_ref, b3_ref, o_ref):
    j = pl.program_id(0)

    # ---- Layer 1 on the VPU (a K=2 MXU matmul is a wasted push/drain) -------------
    x = x_ref[...]                                    # (B, 2)   f32
    w1 = w1_ref[...]                                  # (2, Hp)  f32
    h1 = (x[:, 0:1] * w1[0:1, :]
          + x[:, 1:2] * w1[1:2, :]
          + b1_ref[...])                              # (B, Hp)  f32

    # ---- Layer 2: one TN-wide column tile of W2 (bf16 weights, f32 accumulation) --
    h2 = jnp.dot(h1.astype(jnp.bfloat16), w2_ref[...],
                 preferred_element_type=jnp.float32)  # (B, TN)  f32
    h2 = h2 + b2_ref[...]

    # ---- Layer 3: this tile's partial contribution to the (padded) output ---------
    p = jnp.dot(h2.astype(jnp.bfloat16), w3_ref[...],
                preferred_element_type=jnp.float32)   # (B, OUT_PAD) f32
    # Add the (padded) output bias exactly once (tile 0 only).
    p = p + b3_ref[...] * (j == 0).astype(jnp.float32)

    o_ref[...] = p[None]                              # (1, B, OUT_PAD)


@jax.jit
def dummy_net_forward(x, params):
    """x: (B, 2) float32. params: dict of padded/transposed/bf16-cast weights."""
    B = x.shape[0]

    flops = (2 * B * HIDDEN_PAD * HIDDEN_PAD       # layer 2 (MXU)
             + 2 * B * HIDDEN_PAD * OUT_PAD        # layer 3 (MXU)
             + 4 * B * HIDDEN_PAD)                 # layer 1 (VPU FMAs)
    bytes_accessed = (
        x.size * 4
        + params["w1_t"].size * 4 + params["b1"].size * 4
        + params["w2_t"].size * 2 + params["b2"].size * 4
        + params["w3_t"].size * 2 + params["b3"].size * 4
        + N_TILES * B * OUT_PAD * 4)

    partials = pl.pallas_call(
        _mlp_kernel,
        out_shape=jax.ShapeDtypeStruct((N_TILES, B, OUT_PAD), jnp.float32),
        grid_spec=pltpu.PrefetchScalarGridSpec(
            num_scalar_prefetch=0,
            grid=(N_TILES,),
            in_specs=[
                pl.BlockSpec((B, IN_F), lambda j: (0, 0)),           # x
                pl.BlockSpec((IN_F, HIDDEN_PAD), lambda j: (0, 0)),  # W1^T  (f32)
                pl.BlockSpec((1, HIDDEN_PAD), lambda j: (0, 0)),     # b1    (f32)
                pl.BlockSpec((HIDDEN_PAD, TN), lambda j: (0, j)),    # W2^T tile (bf16)
                pl.BlockSpec((1, TN), lambda j: (0, j)),             # b2 tile   (f32)
                pl.BlockSpec((TN, OUT_PAD), lambda j: (j, 0)),       # W3^T tile (bf16)
                pl.BlockSpec((1, OUT_PAD), lambda j: (0, 0)),        # b3 padded (f32)
            ],
            out_specs=pl.BlockSpec((1, B, OUT_PAD), lambda j: (j, 0, 0)),
        ),
        compiler_params=pltpu.CompilerParams(
            dimension_semantics=("parallel",),       # independent tiles -> v7x 2-TC sharding
            vmem_limit_bytes=32 * 1024 * 1024,
        ),
        cost_estimate=pl.CostEstimate(
            flops=flops, transcendentals=0, bytes_accessed=bytes_accessed),
    )(
        x,
        params["w1_t"], params["b1"],
        params["w2_t"], params["b2"],
        params["w3_t"], params["b3"],
    )
    # Tiny cross-tile reduction + un-pad of the lane-dense output (plain XLA).
    return jnp.sum(partials, axis=0)[:, :OUT_F]


def init_params(key):
    """Deterministic synthetic parameters matching nn.Linear shapes (out, in),
    then transposed to (in, out), zero-padded, and cast (W2/W3 -> bf16)."""
    k1, k2, k3, k4, k5, k6 = jax.random.split(key, 6)

    # PyTorch shapes: W1 (2000, 2), W2 (2000, 2000), W3 (2, 2000); biases (out,)
    w1 = jax.random.uniform(k1, (HIDDEN, IN_F), jnp.float32, -0.5, 0.5)
    b1 = jax.random.uniform(k2, (HIDDEN,), jnp.float32, -0.5, 0.5)
    w2 = jax.random.uniform(k3, (HIDDEN, HIDDEN), jnp.float32, -0.02, 0.02)
    b2 = jax.random.uniform(k4, (HIDDEN,), jnp.float32, -0.02, 0.02)
    w3 = jax.random.uniform(k5, (OUT_F, HIDDEN), jnp.float32, -0.02, 0.02)
    b3 = jax.random.uniform(k6, (OUT_F,), jnp.float32, -0.02, 0.02)

    ph = HIDDEN_PAD - HIDDEN
    po = OUT_PAD - OUT_F

    padded = {
        # Layer 1 stays f32 (tiny; feeds the VPU path, keeps full input precision).
        "w1_t": jnp.pad(w1.T, ((0, 0), (0, ph))),                        # (2, 2048)   f32
        "b1":   jnp.pad(b1, (0, ph)).reshape(1, HIDDEN_PAD),             # (1, 2048)   f32
        # Bandwidth-dominant weights stored bf16; kernel accumulates in f32.
        "w2_t": jnp.pad(w2.T, ((0, ph), (0, ph))).astype(jnp.bfloat16),  # (2048, 2048) bf16
        "b2":   jnp.pad(b2, (0, ph)).reshape(1, HIDDEN_PAD),             # (1, 2048)   f32
        "w3_t": jnp.pad(w3.T, ((0, ph), (0, po))).astype(jnp.bfloat16),  # (2048, 128) bf16
        "b3":   jnp.pad(b3, (0, po)).reshape(1, OUT_PAD),                # (1, 128)    f32
    }
    raw = {"w1": w1, "b1": b1, "w2": w2, "b2": b2, "w3": w3, "b3": b3}
    return padded, raw


def reference_forward(x, raw):
    h = x @ raw["w1"].T + raw["b1"]
    h = h @ raw["w2"].T + raw["b2"]
    h = h @ raw["w3"].T + raw["b3"]
    return h


if __name__ == "__main__":
    key = jax.random.PRNGKey(0)
    kx, kp = jax.random.split(key)

    B = 8
    x = jax.random.normal(kx, (B, IN_F), jnp.float32)

    params, raw = init_params(kp)

    out = dummy_net_forward(x, params)
    out = jax.block_until_ready(out)

    ref = reference_forward(x, raw)
    assert out.shape == (B, OUT_F), out.shape
    # Tolerance accommodates bf16 weight storage (accumulation is f32).
    max_err = float(jnp.max(jnp.abs(out - ref)))
    assert jnp.allclose(out, ref, atol=1e-2, rtol=1e-2), max_err

    print("KERNEL_OK")
</pallas_src>

<mosaic_0001>
module attributes {stable_mosaic.version = 11 : i64} {
  func.func @_mlp_kernel(%arg0: i32, %arg1: memref<8x2xf32, #tpu.memory_space<vmem>>, %arg2: memref<2x2048xf32, #tpu.memory_space<vmem>>, %arg3: memref<1x2048xf32, #tpu.memory_space<vmem>>, %arg4: memref<2048x512xbf16, #tpu.memory_space<vmem>>, %arg5: memref<1x512xf32, #tpu.memory_space<vmem>>, %arg6: memref<512x128xbf16, #tpu.memory_space<vmem>>, %arg7: memref<1x128xf32, #tpu.memory_space<vmem>>, %arg8: memref<1x8x128xf32, #tpu.memory_space<vmem>>) attributes {dimension_semantics = [#tpu.dimension_semantics<parallel>], iteration_bounds = array<i64: 4>, scalar_prefetch = 0 : i64, scratch_operands = 0 : i64, tpu.core_type = #tpu.core_type<tc>, window_params = [{pipeline_mode = #tpu.pipeline_mode<synchronous>, transform_indices = @transform_0, window_bounds = array<i64: 8, 2>}, {pipeline_mode = #tpu.pipeline_mode<synchronous>, transform_indices = @transform_1, window_bounds = array<i64: 2, 2048>}, {pipeline_mode = #tpu.pipeline_mode<synchronous>, transform_indices = @transform_2, window_bounds = array<i64: 1, 2048>}, {transform_indices = @transform_3, window_bounds = array<i64: 2048, 512>}, {transform_indices = @transform_4, window_bounds = array<i64: 1, 512>}, {transform_indices = @transform_5, window_bounds = array<i64: 512, 128>}, {pipeline_mode = #tpu.pipeline_mode<synchronous>, transform_indices = @transform_6, window_bounds = array<i64: 1, 128>}, {transform_indices = @transform_7, window_bounds = array<i64: 1, 8, 128>}]} {
    %c0 = arith.constant 0 : index
    %c0_0 = arith.constant 0 : index
    %0 = vector.load %arg1[%c0, %c0_0] : memref<8x2xf32, #tpu.memory_space<vmem>>, vector<8x2xf32>
    %c0_1 = arith.constant 0 : index
    %c0_2 = arith.constant 0 : index
    %1 = vector.load %arg2[%c0_1, %c0_2] : memref<2x2048xf32, #tpu.memory_space<vmem>>, vector<2x2048xf32>
    %2 = vector.extract_strided_slice %0 {offsets = [0, 0], sizes = [8, 1], strides = [1, 1]} : vector<8x2xf32> to vector<8x1xf32>
    %3 = vector.extract_strided_slice %1 {offsets = [0, 0], sizes = [1, 2048], strides = [1, 1]} : vector<2x2048xf32> to vector<1x2048xf32>
    %4 = vector.broadcast %2 : vector<8x1xf32> to vector<8x2048xf32>
    %5 = vector.broadcast %3 : vector<1x2048xf32> to vector<8x2048xf32>
    %6 = arith.mulf %4, %5 : vector<8x2048xf32>
    %7 = vector.extract_strided_slice %0 {offsets = [0, 1], sizes = [8, 1], strides = [1, 1]} : vector<8x2xf32> to vector<8x1xf32>
    %8 = vector.extract_strided_slice %1 {offsets = [1, 0], sizes = [1, 2048], strides = [1, 1]} : vector<2x2048xf32> to vector<1x2048xf32>
    %9 = vector.broadcast %7 : vector<8x1xf32> to vector<8x2048xf32>
    %10 = vector.broadcast %8 : vector<1x2048xf32> to vector<8x2048xf32>
    %11 = arith.mulf %9, %10 : vector<8x2048xf32>
    %12 = arith.addf %6, %11 : vector<8x2048xf32>
    %c0_3 = arith.constant 0 : index
    %c0_4 = arith.constant 0 : index
    %13 = vector.load %arg3[%c0_3, %c0_4] : memref<1x2048xf32, #tpu.memory_space<vmem>>, vector<1x2048xf32>
    %14 = vector.broadcast %13 : vector<1x2048xf32> to vector<8x2048xf32>
    %15 = arith.addf %12, %14 : vector<8x2048xf32>
    %16 = arith.truncf %15 : vector<8x2048xf32> to vector<8x2048xbf16>
    %c0_5 = arith.constant 0 : index
    %c0_6 = arith.constant 0 : index
    %17 = vector.load %arg4[%c0_5, %c0_6] : memref<2048x512xbf16, #tpu.memory_space<vmem>>, vector<2048x512xbf16>
    %cst = arith.constant dense<0.000000e+00> : vector<8x512xf32>
    %18 = tpu.matmul %16, %17, %cst {dimension_numbers = #tpu.dot_dimension_numbers<[1], [0], [0], [1], [0, 0, 1, 1], [], []>} : vector<8x2048xbf16>, vector<2048x512xbf16>, vector<8x512xf32> -> vector<8x512xf32>
    %c0_7 = arith.constant 0 : index
    %c0_8 = arith.constant 0 : index
    %19 = vector.load %arg5[%c0_7, %c0_8] : memref<1x512xf32, #tpu.memory_space<vmem>>, vector<1x512xf32>
    %20 = vector.broadcast %19 : vector<1x512xf32> to vector<8x512xf32>
    %21 = arith.addf %18, %20 : vector<8x512xf32>
    %22 = arith.truncf %21 : vector<8x512xf32> to vector<8x512xbf16>
    %c0_9 = arith.constant 0 : index
    %c0_10 = arith.constant 0 : index
    %23 = vector.load %arg6[%c0_9, %c0_10] : memref<512x128xbf16, #tpu.memory_space<vmem>>, vector<512x128xbf16>
    %cst_11 = arith.constant dense<0.000000e+00> : vector<8x128xf32>
    %24 = tpu.matmul %22, %23, %cst_11 {dimension_numbers = #tpu.dot_dimension_numbers<[1], [0], [0], [1], [0, 0, 1, 1], [], []>} : vector<8x512xbf16>, vector<512x128xbf16>, vector<8x128xf32> -> vector<8x128xf32>
    %c0_12 = arith.constant 0 : index
    %c0_13 = arith.constant 0 : index
    %25 = vector.load %arg7[%c0_12, %c0_13] : memref<1x128xf32, #tpu.memory_space<vmem>>, vector<1x128xf32>
    %c0_i32 = arith.constant 0 : i32
    %26 = arith.cmpi eq, %arg0, %c0_i32 : i32
    %27 = arith.extui %26 : i1 to i32
    %28 = arith.sitofp %27 : i32 to f32
    %29 = vector.broadcast %28 : f32 to vector<1x128xf32>
    %30 = arith.mulf %25, %29 : vector<1x128xf32>
    %31 = vector.broadcast %30 : vector<1x128xf32> to vector<8x128xf32>
    %32 = arith.addf %24, %31 : vector<8x128xf32>
    %33 = vector.shape_cast %32 : vector<8x128xf32> to vector<1x8x128xf32>
    %c0_14 = arith.constant 0 : index
    %c0_15 = arith.constant 0 : index
    %c0_16 = arith.constant 0 : index
    %34 = vector.load %arg8[%c0_14, %c0_15, %c0_16] : memref<1x8x128xf32, #tpu.memory_space<vmem>>, vector<1x8x128xf32>
    tpu.vector_store %arg8[%c0_14, %c0_15, %c0_16], %33 {strides = array<i32>} : memref<1x8x128xf32, #tpu.memory_space<vmem>>, vector<1x8x128xf32>,
    return
  }
  func.func @transform_0(%arg0: i32) -> (i32, i32) {
    %c0_i32 = arith.constant 0 : i32
    %c0_i32_0 = arith.constant 0 : i32
    %c0_i32_1 = arith.constant 0 : i32
    return %c0_i32, %c0_i32_0 : i32, i32
  }
  func.func @transform_1(%arg0: i32) -> (i32, i32) {
    %c0_i32 = arith.constant 0 : i32
    %c0_i32_0 = arith.constant 0 : i32
    %c0_i32_1 = arith.constant 0 : i32
    return %c0_i32, %c0_i32_0 : i32, i32
  }
  func.func @transform_2(%arg0: i32) -> (i32, i32) {
    %c0_i32 = arith.constant 0 : i32
    %c0_i32_0 = arith.constant 0 : i32
    %c0_i32_1 = arith.constant 0 : i32
    return %c0_i32, %c0_i32_0 : i32, i32
  }
  func.func @transform_3(%arg0: i32) -> (i32, i32) {
    %c0_i32 = arith.constant 0 : i32
    %c0_i32_0 = arith.constant 0 : i32
    return %c0_i32, %arg0 : i32, i32
  }
  func.func @transform_4(%arg0: i32) -> (i32, i32) {
    %c0_i32 = arith.constant 0 : i32
    %c0_i32_0 = arith.constant 0 : i32
    return %c0_i32, %arg0 : i32, i32
  }
  func.func @transform_5(%arg0: i32) -> (i32, i32) {
    %c0_i32 = arith.constant 0 : i32
    %c0_i32_0 = arith.constant 0 : i32
    return %arg0, %c0_i32 : i32, i32
  }
  func.func @transform_6(%arg0: i32) -> (i32, i32) {
    %c0_i32 = arith.constant 0 : i32
    %c0_i32_0 = arith.constant 0 : i32
    %c0_i32_1 = arith.constant 0 : i32
    return %c0_i32, %c0_i32_0 : i32, i32
  }
  func.func @transform_7(%arg0: i32) -> (i32, i32, i32) {
    %c0_i32 = arith.constant 0 : i32
    %c0_i32_0 = arith.constant 0 : i32
    %c0_i32_1 = arith.constant 0 : i32
    return %arg0, %c0_i32, %c0_i32_0 : i32, i32, i32
  }
}

</mosaic_0001>

<bundles_post_ra>
// kernel: dummy_net_forward.1
= control target key start
LH: loop header
LB: loop body
LE: loop exit
PB: predicated region body
PF: predicated region fallthrough
CT: control target
= control target key end

     0   :  { %s7977_s0 = inlined_call_operand.vmem [shape: f32[8,2], index: 0, kind: input, shape index: {}]   ;;  %s7978_s1 = inlined_call_operand.hbm [shape: f32[2,2048], index: 1, kind: input, shape index: {}]   ;;  %s7979_s2 = inlined_call_operand.hbm [shape: f32[1,2048], index: 2, kind: input, shape index: {}]   ;;  %s7980_s3 = inlined_call_operand.hbm [shape: bf16[2048,2048], index: 3, kind: input, shape index: {}]   ;;  %s7981_s4 = inlined_call_operand.hbm [shape: f32[1,2048], index: 4, kind: input, shape index: {}]   ;;  %s7982_s5 = inlined_call_operand.hbm [shape: bf16[2048,128], index: 5, kind: input, shape index: {}]   ;;  %s7983_s6 = inlined_call_operand.hbm [shape: f32[1,128], index: 6, kind: input, shape index: {}]   ;;  %s7984_s7 = inlined_call_operand.vmem [shape: f32[4,8,128], index: 7, kind: output, shape index: {}]  }
   0x1   :  { %7998 = sst [smem:[#allocation17_spill]] %s7978_s1 }
   0x2   :  { %7999 = sst [smem:[#allocation18_spill]] %s7980_s3 }
   0x3   :  { %8000 = sst [smem:[#allocation19_spill]] %s7984_s7 }
   0x4   :  { %12 = vsyncpa [#allocation3], 0 }
   0x5   :  { %13 = vsyncpa [#allocation5], 0  ;;  %s6959_s24 = smov 0   ;;  %s6961_s25 = smov 0  }
   0x6   :  { %s6963_s26 = smov 0   ;;  %s6965_s27 = smov 0  }
   0x7 LB: > { %8001 = sst [smem:[#allocation14_spill]] %s6900_s26  ;;  %s6978_s28 = sadd.s32 4294967295, %s6904_s27   ;;  %s6904_s27 = sphi %s6965_s27, %s8030_s27   ;;  %s6900_s26 = sphi %s6963_s26, %s8032_s26   ;;  %s6896_s25 = sphi %s6961_s25, %s8034_s25   ;;  %s6892_s24 = sphi %s6959_s24, %s8033_s24  }
   0x8   : > { %s6981_s29 = sadd.s32 1, %s6904_s27   ;;  %s89_s8 = sadd.s32 1, %s6900_s26 }
   0x9   : > { %8002 = sst [smem:[#allocation15_spill]] %s6981_s29  ;;  %s86_s30 = ssub.s32 %s6904_s27, %s6981_s29 }
   0xa   : > { %p87_p0 = scmp.eq.s32.totalorder %s86_s30, 0  ;;  %p96_p1 = scmp.ne.s32.totalorder %s6900_s26, %s6896_s25 }
   0xb   : > { %p97_p2 = scmp.eq.s32.totalorder %s6904_s27, 0  ;;  %p102_p3 = scmp.ne.s32.totalorder %s6896_s25, %s6892_s24 }
   0xc   : > { %s6991_s9 = scalar_select %p87_p0, %s6900_s26, %s89_s8  }
   0xd   : > { %p6993_p4 = por %p97_p2, %p96_p1  ;;  %p7985_p5 = scmp.eq.s32.totalorder %s6978_s28, 0 }
   0xe   : > { %8003 = sst [smem:[#allocation16_spill]] %s6991_s9  ;;  %p5115_p6 = scmp.ge.s32.totalorder %s6904_s27, 1 }
   0xf   : > { %p212_p7 = scmp.lt.s32.totalorder %s6904_s27, 5  ;;  %p7002_p8 = por %p7985_p5, %p102_p3 }
  0x10   : > { %s6906_s13 = smov [#allocation2]   ;;  %p5831_p11 = scmp.lt.s32.totalorder %s6904_s27, 4 }
  0x11   : > { %s8005_s11 = scalar_select %p7002_p8, 1, 0 }
  0x12   : > { %p7006_p9 = pnand %p5115_p6, %p212_p7  ;;  %s228_s14 = sshll.u32 %s6906_s13, 4  ;;  %s229_s14 = int_to_ptr.vmem [resolvable:$true] %s228_s14 }
  0x13   : > { %s261_s15 = sand.u32 1, %s6904_s27   ;;  %p7022_p13 = pnand %p5831_p11, %p6993_p4 }
  0x14   : > { %s8006_s12 = scalar_select %p7006_p9, 1, 0 }
  0x15   : > { %p5808_p10 = pneg %p7006_p9  ;;  %s7027_s18 = sand.u32 1, %s6900_s26  }
  0x16   : > { %s8008_s17 = scalar_select %p7022_p13, 1, 0 }
  0x17   : > { %p7016_p12 = pnand %p5808_p10, %p7985_p5  ;;  %s5120_s19 = sshll.u32 %s7027_s18, 12 }
  0x18   : > { %s8009_s1 = sld [smem:[#allocation17_spill]] }
  0x19   : > { %s8007_s16 = scalar_select %p7016_p12, 1, 0 }
  0x1a   : > { %p7038_p1 = pneg %p7016_p12 }
  0x1c   : > { %s8010_s30 = scalar_select %p7038_p1, 1, 0 }
  0x1e   : > { %s6684_s22 = scalar_lea.hbm %s8009_s1, 512 }
  0x1f   : > { %p6685_p0 = scmp.ne.s32.totalorder %s8009_s1, %s6684_s22  ;;  %p6691_p4 = scmp.lt.u32.totalorder %s6684_s22, %s8009_s1 }
  0x21   : > { %p6687_p2 = pnand %p7038_p1, %p6685_p0 }
  0x23   : > { %p6688_p3 = pneg %p6687_p2 }
  0x25   : > { %p6693_p6 = pnand %p6691_p4, %p6688_p3 }
  0x27   : > { %6696 = shalt.err (!%p6693_p6)
}
  0x28   : > { %s6697_s13 = scalar_lea.vmem %s229_s14, 512  ;;  %p6705_p5 = scmp.lt.s32.totalorder %s229_s14, %s229_s14 }
  0x29   : > { %p6698_p7 = scmp.ne.s32.totalorder %s229_s14, %s6697_s13  ;;  %p6706_p8 = scmp.lt.s32.totalorder %s6697_s13, %s6697_s13 }
  0x2b   : > { %p6700_p10 = pnand %p6698_p7, %p7038_p1  ;;  %p6707_p9 = por %p6706_p8, %p6705_p5 }
  0x2d   : > { %p6701_p11 = pneg %p6700_p10 }
  0x2f   : > { %p6708_p13 = pnand %p6707_p9, %p6701_p11 }
  0x31   : > { %6711 = shalt.err (!%p6708_p13)
}
  0x32   : > { %5811 = dma.hbm_to_vmem [thread:$0]  (!%p7016_p12), %s8009_s1, 512, %s229_s14, [#allocation3]  }
  0x33   : > { %s5683_s22 = sshll.u32 %s6904_s27, 8  ;;  %s265_s23 = scalar_lea.vmem [#allocation6], %s5120_s19 }
  0x34   : > { %s272_s24 = sshll.u32 %s265_s23, 4  ;;  %s8011_s3 = sld [smem:[#allocation18_spill]]  ;;  %s7060_s24 = int_to_ptr.vmem [resolvable:$true] %s272_s24 }
  0x35   : > { %s7062_s13 = scalar_lea.sflag [#allocation3], %s261_s15  ;;  %p8012_p8 = scmp.ne.s32.totalorder %s8008_s17, 0 }
  0x37   : > { %p7068_p9 = pneg %p8012_p8 }
  0x3a   : > { %s7058_s9 = scalar_lea.hbm %s8011_s3, %s5683_s22  ;;  %s6717_s22 = scalar_lea.hbm %s8011_s3, 262144 }
  0x3b   : > { %s6712_s20 = scalar_lea.hbm %s7058_s9, 65536  ;;  %p6718_p2 = scmp.lt.u32.totalorder %s7058_s9, %s8011_s3 }
  0x3c   : > { %p6713_p5 = scmp.ne.s32.totalorder %s7058_s9, %s6712_s20  ;;  %p6719_p3 = scmp.lt.u32.totalorder %s6717_s22, %s6712_s20 }
  0x3d   : > { %p6721_p6 = scmp.lt.u32.totalorder %s6712_s20, %s7058_s9 }
  0x3e   : > { %p6715_p13 = pnand %p7068_p9, %p6713_p5  ;;  %p6720_p4 = por %p6719_p3, %p6718_p2 }
  0x40   : > { %p6716_p0 = pneg %p6715_p13  ;;  %p6722_p7 = por %p6721_p6, %p6720_p4 }
  0x42   : > { %p6723_p10 = pnand %p6722_p7, %p6716_p0 }
  0x44   : > { %6726 = shalt.err (!%p6723_p10)
}
  0x45   : > { %s6727_s15 = scalar_lea.vmem %s7060_s24, 65536  ;;  %s6907_s10 = smov [#allocation6]  }
  0x46   : > { %p6728_p11 = scmp.ne.s32.totalorder %s7060_s24, %s6727_s15  ;;  %s6732_s19 = sshll.u32 %s6907_s10, 4  ;;  %s6733_s19 = int_to_ptr.vmem [resolvable:$false] %s6732_s19 }
  0x47   : > { %s6734_s21 = scalar_lea.vmem %s6733_s19, 131072  ;;  %p6735_p12 = scmp.lt.s32.totalorder %s7060_s24, %s6733_s19 }
  0x48   : > { %p6730_p5 = pnand %p6728_p11, %p7068_p9  ;;  %p6736_p1 = scmp.lt.s32.totalorder %s6734_s21, %s6727_s15 }
  0x4a   : > { %p6731_p13 = pneg %p6730_p5  ;;  %p6737_p2 = por %p6736_p1, %p6735_p12 }
  0x4c   : > { %p6738_p3 = pnand %p6737_p2, %p6731_p13 }
  0x4e   : > { %6741 = shalt.err (!%p6738_p3)
}
  0x4f   : > { %s6908_s20 = smov 1024   ;;  %s6909_s22 = smov 256  }
  0x50   : > { %s6910_s23 = smov 16   ;;  %s6911_s8 = smov [#allocation4]  }
  0x51   : > { %5821 = dma.hbm_to_vmem [thread:$0]  (!%p8012_p8), %s7058_s9, 65536, %s7060_s24, %s7062_s13, %s6908_s20, %s6909_s22, %s6910_s23  }
  0x52   : > { %s239_s10 = sshll.u32 %s6911_s8, 4  ;;  %s5123_s1 = sshll.u32 %s7027_s18, 2  ;;  %s240_s10 = int_to_ptr.vmem [resolvable:$true] %s239_s10 }
  0x53   : > { %s6742_s21 = scalar_lea.hbm %s7979_s2, 256  ;;  %p8014_p1 = scmp.ne.s32.totalorder %s8010_s30, 0 }
  0x54   : > { %p6743_p12 = scmp.ne.s32.totalorder %s7979_s2, %s6742_s21  ;;  %p6749_p6 = scmp.lt.u32.totalorder %s6742_s21, %s7979_s2 }
  0x56   : > { %p6745_p0 = pnand %p6743_p12, %p8014_p1 }
  0x58   : > { %p6746_p4 = pneg %p6745_p0 }
  0x5a   : > { %p6751_p7 = pnand %p6749_p6, %p6746_p4 }
  0x5c   : > { %6754 = shalt.err (!%p6751_p7)
}
  0x5d   : > { %s6755_s9 = scalar_lea.vmem %s240_s10, 256  ;;  %p6763_p13 = scmp.lt.s32.totalorder %s240_s10, %s240_s10 }
  0x5e   : > { %p6756_p10 = scmp.ne.s32.totalorder %s240_s10, %s6755_s9  ;;  %p6764_p2 = scmp.lt.s32.totalorder %s6755_s9, %s6755_s9 }
  0x60   : > { %p6758_p11 = pnand %p6756_p10, %p8014_p1  ;;  %p6765_p3 = por %p6764_p2, %p6763_p13 }
  0x62   : > { %p6759_p5 = pneg %p6758_p11 }
  0x64   : > { %p6766_p8 = pnand %p6765_p3, %p6759_p5 }
  0x66   : > { %6769 = shalt.err (!%p6766_p8)
}
  0x67   : > { %p8015_p12 = scmp.ne.s32.totalorder %s8007_s16, 0  ;;  %s5684_s7 = sshll.u32 %s6904_s27, 6 }
  0x68   : > { %s286_s29 = scalar_lea.vmem [#allocation7], %s5123_s1  ;;  %s292_s23 = scalar_lea.hbm %s7981_s4, %s5684_s7 }
  0x69   : > { %5814 = dma.hbm_to_vmem [thread:$0]  (!%p8015_p12), %s7979_s2, 256, %s240_s10, [#allocation5]  }
  0x6a   : > { %s294_s24 = sshll.u32 %s286_s29, 4  ;;  %s6770_s8 = scalar_lea.hbm %s292_s23, 64  ;;  %s295_s24 = int_to_ptr.vmem [resolvable:$true] %s294_s24 }
  0x6b   : > { %p6771_p0 = scmp.ne.s32.totalorder %s292_s23, %s6770_s8  ;;  %s6775_s21 = scalar_lea.hbm %s7981_s4, 256 }
  0x6c   : > { %p6776_p6 = scmp.lt.u32.totalorder %s292_s23, %s7981_s4  ;;  %p6777_p7 = scmp.lt.u32.totalorder %s6775_s21, %s6770_s8 }
  0x6d   : > { %p6773_p8 = pnand %p6771_p0, %p7068_p9  ;;  %p6779_p11 = scmp.lt.u32.totalorder %s6770_s8, %s292_s23 }
  0x6e   : > { %p6778_p10 = por %p6777_p7, %p6776_p6 }
  0x6f   : > { %p6774_p4 = pneg %p6773_p8 }
  0x70   : > { %p6780_p5 = por %p6779_p11, %p6778_p10 }
  0x72   : > { %p6781_p13 = pnand %p6780_p5, %p6774_p4 }
  0x74   : > { %6784 = shalt.err (!%p6781_p13)
}
  0x75   : > { %s6785_s1 = scalar_lea.vmem %s295_s24, 64  ;;  %s6912_s10 = smov [#allocation7]  }
  0x76   : > { %p6786_p2 = scmp.ne.s32.totalorder %s295_s24, %s6785_s1  ;;  %s6790_s26 = sshll.u32 %s6912_s10, 4  ;;  %s6791_s26 = int_to_ptr.vmem [resolvable:$false] %s6790_s26 }
  0x77   : > { %s6792_s7 = scalar_lea.vmem %s6791_s26, 128  ;;  %p6793_p8 = scmp.lt.s32.totalorder %s295_s24, %s6791_s26 }
  0x78   : > { %p6788_p3 = pnand %p6786_p2, %p7068_p9  ;;  %p6794_p12 = scmp.lt.s32.totalorder %s6792_s7, %s6785_s1 }
  0x7a   : > { %p6789_p0 = pneg %p6788_p3  ;;  %p6795_p1 = por %p6794_p12, %p6793_p8 }
  0x7c   : > { %p6796_p6 = pnand %p6795_p1, %p6789_p0 }
  0x7e   : > { %6799 = shalt.err (!%p6796_p6)
}
  0x7f   : > { %p8016_p7 = scmp.ne.s32.totalorder %s8008_s17, 0  ;;  %s5126_s29 = sshll.u32 %s7027_s18, 8 }
  0x80   : > { %s6913_s20 = smov [#allocation9]   ;;  %s5685_s8 = sshll.u32 %s6904_s27, 12 }
  0x81   : > { %5824 = dma.hbm_to_vmem [thread:$0]  (!%p8016_p7), %s292_s23, 64, %s295_s24, %s7062_s13  }
  0x82   : > { %s250_s22 = sshll.u32 %s6913_s20, 4  ;;  %s6800_s21 = scalar_lea.hbm %s7983_s6, 16  ;;  %s251_s22 = int_to_ptr.vmem [resolvable:$true] %s250_s22 }
  0x83   : > { %p6801_p1 = scmp.ne.s32.totalorder %s7983_s6, %s6800_s21  ;;  %p8017_p12 = scmp.ne.s32.totalorder %s8010_s30, 0 }
  0x84   : > { %p6807_p11 = scmp.lt.u32.totalorder %s6800_s21, %s7983_s6 }
  0x85   : > { %p6803_p4 = pnand %p6801_p1, %p8017_p12 }
  0x87   : > { %p6804_p10 = pneg %p6803_p4 }
  0x89   : > { %p6809_p5 = pnand %p6807_p11, %p6804_p10 }
  0x8b   : > { %6812 = shalt.err (!%p6809_p5)
}
  0x8c   : > { %s6813_s18 = scalar_lea.vmem %s251_s22, 16  ;;  %s6820_s27 = scalar_lea.vmem %s251_s22, 32 }
  0x8d   : > { %p6814_p13 = scmp.ne.s32.totalorder %s251_s22, %s6813_s18  ;;  %p6821_p0 = scmp.lt.s32.totalorder %s251_s22, %s251_s22 }
  0x8e   : > { %p6822_p8 = scmp.lt.s32.totalorder %s6820_s27, %s6813_s18 }
  0x8f   : > { %p6816_p2 = pnand %p6814_p13, %p8017_p12 }
  0x90   : > { %p6823_p6 = por %p6822_p8, %p6821_p0 }
  0x91   : > { %p6817_p3 = pneg %p6816_p2 }
  0x93   : > { %p6824_p7 = pnand %p6823_p6, %p6817_p3 }
  0x95   : > { %6827 = shalt.err (!%p6824_p7)
}
  0x96   : > { %p8018_p1 = scmp.ne.s32.totalorder %s8007_s16, 0  ;;  %s7151_s20 = scalar_lea.hbm %s7982_s5, %s5685_s8 }
  0x97   : > { %s305_s30 = scalar_lea.vmem [#allocation8], %s5126_s29  ;;  %s6828_s15 = scalar_lea.hbm %s7151_s20, 4096 }
  0x98   : > { %5817 = dma.hbm_to_vmem [thread:$0]  (!%p8018_p1), %s7983_s6, 16, %s251_s22, [#allocation5]  }
  0x99   : > { %s312_s19 = sshll.u32 %s305_s30, 4  ;;  %p6829_p7 = scmp.ne.s32.totalorder %s7151_s20, %s6828_s15  ;;  %s7153_s19 = int_to_ptr.vmem [resolvable:$true] %s312_s19 }
  0x9a   : > { %s6833_s21 = scalar_lea.hbm %s7982_s5, 16384  ;;  %p6834_p10 = scmp.lt.u32.totalorder %s7151_s20, %s7982_s5 }
  0x9b   : > { %p6831_p12 = pnand %p6829_p7, %p7068_p9  ;;  %p6835_p11 = scmp.lt.u32.totalorder %s6833_s21, %s6828_s15 }
  0x9c   : > { %p6837_p13 = scmp.lt.u32.totalorder %s6828_s15, %s7151_s20 }
  0x9d   : > { %p6832_p4 = pneg %p6831_p12  ;;  %p6836_p5 = por %p6835_p11, %p6834_p10 }
  0x9f   : > { %p6838_p2 = por %p6837_p13, %p6836_p5 }
  0xa1   : > { %p6839_p3 = pnand %p6838_p2, %p6832_p4 }
  0xa3   : > { %6842 = shalt.err (!%p6839_p3)
}
  0xa4   : > { %s6843_s29 = scalar_lea.vmem %s7153_s19, 4096  ;;  %s6914_s3 = smov [#allocation8]  }
  0xa5   : > { %p6844_p0 = scmp.ne.s32.totalorder %s7153_s19, %s6843_s29  ;;  %s6848_s1 = sshll.u32 %s6914_s3, 4  ;;  %s6849_s1 = int_to_ptr.vmem [resolvable:$false] %s6848_s1 }
  0xa6   : > { %s6850_s10 = scalar_lea.vmem %s6849_s1, 8192  ;;  %p6851_p1 = scmp.lt.s32.totalorder %s7153_s19, %s6849_s1 }
  0xa7   : > { %p6846_p8 = pnand %p6844_p0, %p7068_p9  ;;  %p6852_p7 = scmp.lt.s32.totalorder %s6850_s10, %s6843_s29 }
  0xa9   : > { %p6847_p6 = pneg %p6846_p8  ;;  %p6853_p12 = por %p6852_p7, %p6851_p1 }
  0xab   : > { %p6854_p10 = pnand %p6853_p12, %p6847_p6 }
  0xad   : > { %6857 = shalt.err (!%p6854_p10)
}
  0xae   : > { %s6915_s18 = smov 64   ;;  %s6916_s27 = smov 4  }
  0xaf   : > { %p8019_p4 = scmp.ne.s32.totalorder %s8008_s17, 0  ;;  %p8020_p9 = scmp.ne.s32.totalorder %s8006_s12, 0 }
  0xb0   : > { %p8021_p11 = scmp.eq.s32.totalorder (!%p8020_p9), %s6978_s28, 0 }
  0xb1   : > { %5827 = dma.hbm_to_vmem [thread:$0]  (!%p8019_p4), %s7151_s20, 4096, %s7153_s19, %s7062_s13, %s6915_s18, %s6915_s18, %s6916_s27  }
  0xb2   : > { %324 = sbr.rel (%p8020_p9) target bundleno = 1230 (0x4ce), region = 48 }
  0xb9   : > { %6875 = dma.done.wait (%p8021_p11), [#allocation3], 512   ;;  %p8022_p5 = pmov %p8021_p11 }
  0xbb   : > { %6877 = vsyncadd (%p8022_p5), [#allocation3], 4294966784  ;;  %p8023_p13 = pmov %p8022_p5 }
  0xbc   : > { %p8024_p2 = pmov %p8022_p5 }
  0xbd   : > { %6879 = dma.done.wait (%p8023_p13), [#allocation5], 256  }
  0xbe   : > { %6881 = vsyncadd (%p8024_p2), [#allocation5], 4294967040  ;;  %s334_s17 = sand.u32 1, %s6978_s28   ;;  %s336_s13 = sand.u32 1, %s6896_s25  }
  0xbf   : > { %s5132_s14 = sshll.u32 %s336_s13, 12  ;;  %s335_s12 = scalar_lea.sflag [#allocation3], %s334_s17 }
  0xc0   : > { %s7189_s24 = scalar_lea.vmem [#allocation6], %s5132_s14  ;;  %p8025_p3 = scmp.ne.s32.totalorder %s8005_s11, 0 }
  0xc2   : > { %6883 = dma.done.wait (%p8025_p3), %s335_s12, 69696  }
  0xc3   : > { %6885 = vsyncadd (%p8025_p3), %s335_s12, 4294897600  ;;  %s5133_s23 = sshll.u32 %s336_s13, 2  ;;  %s5134_s26 = sshll.u32 %s336_s13, 8 }
  0xc4   : > { %s7195_s7 = scalar_lea.vmem [#allocation7], %s5133_s23  ;;  %s7197_s20 = scalar_lea.vmem [#allocation8], %s5134_s26 }
  0xc5   : > { %p8026_p0 = pmov %p8024_p2 }
  0xc7   : > { %6887 = dma.done.wait (%p8026_p0), [#allocation5], 16   ;;  %p8027_p8 = pmov %p8026_p0 }
  0xc8   : > { %v6917_v0 = vmov 0   ;;  %v408_v1 = vld [vmem:[%s7977_s0] sm:$0xff]  ;;  %v5881_v3 = vld [vmem:[%s7189_s24 + $0xc] ss:$16 sps:$4 sm:$0xff]   ;;  %v5884_v5 = vld [vmem:[%s7189_s24 + $0x8] ss:$16 sps:$4 sm:$0xff]   ;;  %p8028_p6 = pmov %p8026_p0 }
  0xc9   : > { %6889 = vsyncadd (%p8027_p8), [#allocation5], 4294967280  ;;  %5877 = vset.pattern.permute.xlu0 %v6917_v0  ;;  %v5879_v2 = vld [vmem:[%s7189_s24 + $0x4] ss:$16 sps:$4 sm:$0xff]   ;;  %v5883_v4 = vld [vmem:[%s7189_s24] ss:$16 sps:$4 sm:$0xff]   ;;  %4300 = vmatprep.subr.bf16.mxu1 %v5881_v3 }
  0xca   : > { %415 = vperm.xlu0 %5877, %v408_v1   ;;  %3972 = vmatprep.subr.bf16.mxu0 %v5879_v2  ;;  %v5885_v6 = vld [vmem:[%s7189_s24 + $0x24] ss:$16 sps:$4 sm:$0xff]   ;;  %v5887_v7 = vld [vmem:[%s7189_s24 + $0x2c] ss:$16 sps:$4 sm:$0xff]   ;;  %v6918_v8 = vmov 1   ;;  %p403_p1 = scmp.lt.s32.totalorder %s6978_s28, 3 }
  0xcb   : > { %3973 = vmatpush1.bf16.msra.mxu0 %v5883_v4  ;;  %4301 = vmatpush1.bf16.msra.mxu1 %v5884_v5  ;;  %v5889_v9 = vld [vmem:[%s7189_s24 + $0x20] ss:$16 sps:$4 sm:$0xff]   ;;  %v5890_v10 = vld [vmem:[%s7189_s24 + $0x28] ss:$16 sps:$4 sm:$0xff]   ;;  %v5891_v11 = vld [vmem:[%s7189_s24 + $0x44] ss:$16 sps:$4 sm:$0xff]   ;;  %v422_v5 = vlaneseq }
  0xcc   : > { %3974 = vmatprep.subr.bf16.mxu0 %v5885_v6  ;;  %4302 = vmatprep.subr.bf16.mxu1 %v5887_v7  ;;  %v5893_v12 = vld [vmem:[%s7189_s24 + $0x4c] ss:$16 sps:$4 sm:$0xff]   ;;  %v5895_v13 = vld [vmem:[%s7189_s24 + $0x40] ss:$16 sps:$4 sm:$0xff]   ;;  %v5896_v14 = vld [vmem:[%s7189_s24 + $0x48] ss:$16 sps:$4 sm:$0xff]  }
  0xcd   : > { %v5897_v15 = vld [vmem:[%s7189_s24 + $0x64] ss:$16 sps:$4 sm:$0xff]   ;;  %v5899_v16 = vld [vmem:[%s7189_s24 + $0x6c] ss:$16 sps:$4 sm:$0xff]   ;;  %v5901_v17 = vld [vmem:[%s7189_s24 + $0x60] ss:$16 sps:$4 sm:$0xff]  }
  0xce   : > { %5878 = vset.pattern.permute.xlu0 %v6918_v8  ;;  %v5902_v18 = vld [vmem:[%s7189_s24 + $0x68] ss:$16 sps:$4 sm:$0xff]   ;;  %v5903_v19 = vld [vmem:[%s7189_s24 + $0x84] ss:$16 sps:$4 sm:$0xff]   ;;  %v5905_v20 = vld [vmem:[%s7189_s24 + $0x8c] ss:$16 sps:$4 sm:$0xff]  }
  0xcf   : > { %583 = vperm.xlu0 %5878, %v408_v1   ;;  %3975 = vmatpush1.bf16.msra.mxu0 %v5889_v9  ;;  %v5907_v21 = vld [vmem:[%s7189_s24 + $0x80] ss:$16 sps:$4 sm:$0xff]   ;;  %v5908_v22 = vld [vmem:[%s7189_s24 + $0x88] ss:$16 sps:$4 sm:$0xff]   ;;  %v5909_v23 = vld [vmem:[%s7189_s24 + $0xa4] ss:$16 sps:$4 sm:$0xff]  }
  0xd0   : > { %4303 = vmatpush1.bf16.msra.mxu1 %v5890_v10  ;;  %3976 = vmatprep.subr.bf16.mxu0 %v5891_v11  ;;  %v5911_v24 = vld [vmem:[%s7189_s24 + $0xac] ss:$16 sps:$4 sm:$0xff]   ;;  %v5913_v25 = vld [vmem:[%s7189_s24 + $0xa0] ss:$16 sps:$4 sm:$0xff]   ;;  %v5914_v26 = vld [vmem:[%s7189_s24 + $0xa8] ss:$16 sps:$4 sm:$0xff]  }
  0xd1   : > { %4304 = vmatprep.subr.bf16.mxu1 %v5893_v12  ;;  %v5915_v27 = vld [vmem:[%s7189_s24 + $0xc4] ss:$16 sps:$4 sm:$0xff]   ;;  %v5917_v28 = vld [vmem:[%s7189_s24 + $0xcc] ss:$16 sps:$4 sm:$0xff]   ;;  %v5919_v29 = vld [vmem:[%s7189_s24 + $0xc0] ss:$16 sps:$4 sm:$0xff]  }
  0xd2   : > { %v5920_v30 = vld [vmem:[%s7189_s24 + $0xc8] ss:$16 sps:$4 sm:$0xff]   ;;  %v5921_v31 = vld [vmem:[%s7189_s24 + $0xe4] ss:$16 sps:$4 sm:$0xff]   ;;  %v5923_v32 = vld [vmem:[%s7189_s24 + $0xec] ss:$16 sps:$4 sm:$0xff]  }
  0xd3   : > { %3977 = vmatpush1.bf16.msra.mxu0 %v5895_v13  ;;  %v5925_v33 = vld [vmem:[%s7189_s24 + $0xe0] ss:$16 sps:$4 sm:$0xff]   ;;  %v5926_v34 = vld [vmem:[%s7189_s24 + $0xe8] ss:$16 sps:$4 sm:$0xff]   ;;  %v5927_v35 = vld [vmem:[%s7189_s24 + $0x104] ss:$16 sps:$4 sm:$0xff]  }
  0xd4   : > { %4305 = vmatpush1.bf16.msra.mxu1 %v5896_v14  ;;  %3978 = vmatprep.subr.bf16.mxu0 %v5897_v15  ;;  %v5929_v36 = vld [vmem:[%s7189_s24 + $0x10c] ss:$16 sps:$4 sm:$0xff]   ;;  %v5931_v37 = vld [vmem:[%s7189_s24 + $0x100] ss:$16 sps:$4 sm:$0xff]   ;;  %v5932_v38 = vld [vmem:[%s7189_s24 + $0x108] ss:$16 sps:$4 sm:$0xff]  }
  0xd5   : > { %4306 = vmatprep.subr.bf16.mxu1 %v5899_v16  ;;  %v5933_v39 = vld [vmem:[%s7189_s24 + $0x124] ss:$16 sps:$4 sm:$0xff]   ;;  %v5935_v40 = vld [vmem:[%s7189_s24 + $0x12c] ss:$16 sps:$4 sm:$0xff]   ;;  %v5937_v41 = vld [vmem:[%s7189_s24 + $0x120] ss:$16 sps:$4 sm:$0xff]  }
  0xd6   : > { %v5938_v42 = vld [vmem:[%s7189_s24 + $0x128] ss:$16 sps:$4 sm:$0xff]   ;;  %v5939_v43 = vld [vmem:[%s7189_s24 + $0x144] ss:$16 sps:$4 sm:$0xff]   ;;  %v5941_v44 = vld [vmem:[%s7189_s24 + $0x14c] ss:$16 sps:$4 sm:$0xff]  }
  0xd7   : > { %3979 = vmatpush1.bf16.msra.mxu0 %v5901_v17  ;;  %v5943_v45 = vld [vmem:[%s7189_s24 + $0x140] ss:$16 sps:$4 sm:$0xff]   ;;  %v5944_v46 = vld [vmem:[%s7189_s24 + $0x148] ss:$16 sps:$4 sm:$0xff]   ;;  %v5945_v47 = vld [vmem:[%s7189_s24 + $0x164] ss:$16 sps:$4 sm:$0xff]  }
  0xd8   : > { %4307 = vmatpush1.bf16.msra.mxu1 %v5902_v18  ;;  %3980 = vmatprep.subr.bf16.mxu0 %v5903_v19  ;;  %v5947_v48 = vld [vmem:[%s7189_s24 + $0x16c] ss:$16 sps:$4 sm:$0xff]   ;;  %v5949_v49 = vld [vmem:[%s7189_s24 + $0x160] ss:$16 sps:$4 sm:$0xff]   ;;  %v5950_v50 = vld [vmem:[%s7189_s24 + $0x168] ss:$16 sps:$4 sm:$0xff]  }
  0xd9   : > { %4308 = vmatprep.subr.bf16.mxu1 %v5905_v20  ;;  %v5951_v51 = vld [vmem:[%s7189_s24 + $0x184] ss:$16 sps:$4 sm:$0xff]   ;;  %v5953_v52 = vld [vmem:[%s7189_s24 + $0x18c] ss:$16 sps:$4 sm:$0xff]   ;;  %v5955_v53 = vld [vmem:[%s7189_s24 + $0x180] ss:$16 sps:$4 sm:$0xff]  }
  0xda   : > { %v5956_v54 = vld [vmem:[%s7189_s24 + $0x188] ss:$16 sps:$4 sm:$0xff]   ;;  %v5957_v55 = vld [vmem:[%s7189_s24 + $0x1a4] ss:$16 sps:$4 sm:$0xff]   ;;  %v5959_v56 = vld [vmem:[%s7189_s24 + $0x1ac] ss:$16 sps:$4 sm:$0xff]  }
  0xdb   : > { %3981 = vmatpush1.bf16.msra.mxu0 %v5907_v21  ;;  %v5961_v57 = vld [vmem:[%s7189_s24 + $0x1a0] ss:$16 sps:$4 sm:$0xff]   ;;  %v5962_v58 = vld [vmem:[%s7189_s24 + $0x1a8] ss:$16 sps:$4 sm:$0xff]   ;;  %v5963_v59 = vld [vmem:[%s7189_s24 + $0x1c4] ss:$16 sps:$4 sm:$0xff]  }
  0xdc   : > { %4309 = vmatpush1.bf16.msra.mxu1 %v5908_v22  ;;  %3982 = vmatprep.subr.bf16.mxu0 %v5909_v23  ;;  %v5965_v60 = vld [vmem:[%s7189_s24 + $0x1cc] ss:$16 sps:$4 sm:$0xff]   ;;  %v5967_v61 = vld [vmem:[%s7189_s24 + $0x1c0] ss:$16 sps:$4 sm:$0xff]   ;;  %v5968_v62 = vld [vmem:[%s7189_s24 + $0x1c8] ss:$16 sps:$4 sm:$0xff]  }
  0xdd   : > { %4310 = vmatprep.subr.bf16.mxu1 %v5911_v24  ;;  %v5969_v63 = vld [vmem:[%s7189_s24 + $0x1e4] ss:$16 sps:$4 sm:$0xff]   ;;  %v5971_v0 = vld [vmem:[%s7189_s24 + $0x1ec] ss:$16 sps:$4 sm:$0xff]   ;;  %v5973_v1 = vld [vmem:[%s7189_s24 + $0x1e0] ss:$16 sps:$4 sm:$0xff]  }
  0xde   : > { %v5974_v2 = vld [vmem:[%s7189_s24 + $0x1e8] ss:$16 sps:$4 sm:$0xff]   ;;  %v5977_v3 = vld [vmem:[%s7189_s24 + $0x204] ss:$16 sps:$4 sm:$0xff]   ;;  %v5980_v4 = vld [vmem:[%s7189_s24 + $0x20c] ss:$16 sps:$4 sm:$0xff]  }
  0xdf   : > { %3983 = vmatpush1.bf16.msra.mxu0 %v5913_v25  ;;  %v423_v6 = vshrl.u32 %v422_v5, 7  ;;  %v409_v8 = vld [vmem:[#allocation2] sm:$0xff]  ;;  %v7288_v16 = vld [vmem:[#allocation2 + $0x8] sm:$0xff]  ;;  %s4698_s19 = scalar_select %p8028_p6, 1, 0 }
  0xe0   : > { %4311 = vmatpush1.bf16.msra.mxu1 %v5914_v26  ;;  %3984 = vmatprep.subr.bf16.mxu0 %v5915_v27  ;;  %v7291_v18 = vld [vmem:[#allocation4] sm:$0xff]  ;;  %s8036_s28 = smov (!%p403_p1, %s6978_s28), 3  ;;  %s8029_s9 = sld [smem:[#allocation19_spill]] }
  0xe1   : > { %4312 = vmatprep.subr.bf16.mxu1 %v5917_v28  ;;  %v7272_v7 = vsub.s32 0, %v423_v6  ;;  %v7274_v9 = vsub.s32 2, %v423_v6  ;;  %v7276_v10 = vsub.s32 1, %v423_v6  ;;  %v7278_v11 = vsub.s32 6, %v423_v6  ;;  %v5975_v5 = vld [vmem:[%s7189_s24 + $0x200] ss:$16 sps:$4 sm:$0xff]   ;;  %s4699_s15 = scvt.s32.f32 %s4698_s19 }
  0xe2   : > { %v7280_v12 = vsub.s32 4, %v423_v6  ;;  %v7282_v13 = vsub.s32 3, %v423_v6  ;;  %v7284_v14 = vsub.s32 7, %v423_v6  ;;  %v7286_v15 = vsub.s32 5, %v423_v6  ;;  %v5978_v6 = vld [vmem:[%s7189_s24 + $0x208] ss:$16 sps:$4 sm:$0xff]  }
  0xe3   : > { %3985 = vmatpush1.bf16.msra.mxu0 %v5919_v29  ;;  %v429_v17 = vrot.slane %v409_v8, %v7274_v9  ;;  %v425_v19 = vrot.slane %v409_v8, %v7272_v7  ;;  %v437_v20 = vrot.slane %v409_v8, %v7278_v11  ;;  %v589_v23 = vrot.slane %v409_v8, %v7276_v10  ;;  %s5136_s16 = sshll.u32 %s8036_s28, 3 }
  0xe4   : > { %4313 = vmatpush1.bf16.msra.mxu1 %v5920_v30  ;;  %3986 = vmatprep.subr.bf16.mxu0 %v5921_v31  ;;  %v433_v21 = vrot.slane %v409_v8, %v7280_v12  ;;  %v593_v22 = vrot.slane %v409_v8, %v7282_v13  ;;  %v601_v24 = vrot.slane %v409_v8, %v7284_v14 }
  0xe5   : > { %4314 = vmatprep.subr.bf16.mxu1 %v5923_v32  ;;  %v597_v25 = vrot.slane %v409_v8, %v7286_v15  ;;  %v453_v26 = vrot.slane %v7288_v16, %v7278_v11  ;;  %v617_v27 = vrot.slane %v7288_v16, %v7284_v14  ;;  %v449_v28 = vrot.slane %v7288_v16, %v7280_v12 }
  0xe6   : > { %v613_v29 = vrot.slane %v7288_v16, %v7286_v15  ;;  %v773_v31 = vrot.slane %v7291_v18, %v7276_v10  ;;  %v769_v32 = vrot.slane %v7291_v18, %v7272_v7  ;;  %s406_s8 = scalar_lea.vmem %s8029_s9, %s5136_s16 }
  0xe7   : > { %3987 = vmatpush1.bf16.msra.mxu0 %v5925_v33  ;;  %v509_v33 = vrot.slane %v429_v17, %v7272_v7 }
  0xe8   : > { %4315 = vmatpush1.bf16.msra.mxu1 %v5926_v34  ;;  %3988 = vmatprep.subr.bf16.mxu0 %v5927_v35  ;;  %v505_v34 = vrot.slane %v425_v19, %v7272_v7  ;;  %v517_v35 = vrot.slane %v437_v20, %v7272_v7 }
  0xe9   : > { %4316 = vmatprep.subr.bf16.mxu1 %v5929_v36  ;;  %v513_v36 = vrot.slane %v433_v21, %v7272_v7 }
  0xeb   : > { %3989 = vmatpush1.bf16.msra.mxu0 %v5931_v37  ;;  %v673_v37 = vrot.slane %v593_v22, %v7276_v10 }
  0xec   : > { %4317 = vmatpush1.bf16.msra.mxu1 %v5932_v38  ;;  %3990 = vmatprep.subr.bf16.mxu0 %v5933_v39  ;;  %v669_v38 = vrot.slane %v589_v23, %v7276_v10  ;;  %v681_v39 = vrot.slane %v601_v24, %v7276_v10  ;;  %v5983_v24 = vld [vmem:[%s7189_s24 + $0x224] ss:$16 sps:$4 sm:$0xff]  }
  0xed   : > { %4318 = vmatprep.subr.bf16.mxu1 %v5935_v40  ;;  %v677_v40 = vrot.slane %v597_v25, %v7276_v10  ;;  %v5981_v25 = vld [vmem:[%s7189_s24 + $0x220] ss:$16 sps:$4 sm:$0xff]  }
  0xef   : > { %3991 = vmatpush1.bf16.msra.mxu0 %v5937_v41  ;;  %v533_v41 = vrot.slane %v453_v26, %v7272_v7  ;;  %v5984_v26 = vld [vmem:[%s7189_s24 + $0x228] ss:$16 sps:$4 sm:$0xff]  }
  0xf0   : > { %4319 = vmatpush1.bf16.msra.mxu1 %v5938_v42  ;;  %3992 = vmatprep.subr.bf16.mxu0 %v5939_v43  ;;  %v697_v42 = vrot.slane %v617_v27, %v7276_v10  ;;  %v529_v43 = vrot.slane %v449_v28, %v7272_v7  ;;  %v5986_v27 = vld [vmem:[%s7189_s24 + $0x22c] ss:$16 sps:$4 sm:$0xff]  }
  0xf1   : > { %4320 = vmatprep.subr.bf16.mxu1 %v5941_v44  ;;  %v693_v44 = vrot.slane %v613_v29, %v7276_v10  ;;  %v5989_v29 = vld [vmem:[%s7189_s24 + $0x244] ss:$16 sps:$4 sm:$0xff]  }
  0xf3   : > { %3993 = vmatpush1.bf16.msra.mxu0 %v5943_v45  ;;  %v781_v45 = vrot.slane %v7291_v18, %v7282_v13 }
  0xf4   : > { %4321 = vmatpush1.bf16.msra.mxu1 %v5944_v46  ;;  %3994 = vmatprep.subr.bf16.mxu0 %v5945_v47  ;;  %v777_v46 = vrot.slane %v7291_v18, %v7274_v9  ;;  %v797_v47 = vrot.slane %v7291_v18, %v7284_v14 }
  0xf5   : > { %4322 = vmatprep.subr.bf16.mxu1 %v5947_v48  ;;  %v793_v48 = vrot.slane %v7291_v18, %v7278_v11 }
  0xf7   : > { %3995 = vmatpush1.bf16.msra.mxu0 %v5949_v49 }
  0xf8   : > { %4323 = vmatpush1.bf16.msra.mxu1 %v5950_v50  ;;  %3996 = vmatprep.subr.bf16.mxu0 %v5951_v51 }
  0xf9   : > { %4324 = vmatprep.subr.bf16.mxu1 %v5953_v52 }
  0xfb   : > { %3997 = vmatpush1.bf16.msra.mxu0 %v5955_v53 }
  0xfc   : > { %4325 = vmatpush1.bf16.msra.mxu1 %v5956_v54  ;;  %3998 = vmatprep.subr.bf16.mxu0 %v5957_v55 }
  0xfd   : > { %4326 = vmatprep.subr.bf16.mxu1 %v5959_v56 }
  0xff   : > { %3999 = vmatpush1.bf16.msra.mxu0 %v5961_v57 }
 0x100   : > { %4327 = vmatpush1.bf16.msra.mxu1 %v5962_v58  ;;  %4000 = vmatprep.subr.bf16.mxu0 %v5963_v59 }
 0x101   : > { %4328 = vmatprep.subr.bf16.mxu1 %v5965_v60 }
 0x103   : > { %4001 = vmatpush1.bf16.msra.mxu0 %v5967_v61 }
 0x104   : > { %4329 = vmatpush1.bf16.msra.mxu1 %v5968_v62  ;;  %4002 = vmatprep.subr.bf16.mxu0 %v5969_v63 }
 0x105   : > { %4330 = vmatprep.subr.bf16.mxu1 %v5971_v0 }
 0x107   : > { %4003 = vmatpush1.bf16.msra.mxu0 %v5973_v1 }
 0x108   : > { %4331 = vmatpush1.bf16.msra.mxu1 %v5974_v2  ;;  %4013 = vmatprep.subr.bf16.mxu0 %v5977_v3 }
 0x109   : > { %4341 = vmatprep.subr.bf16.mxu1 %v5980_v4 }
 0x149   : > { %v7308_v30 = vpop.permute.xlu0 %415 }
 0x14a   : > { %v567_v50 = vmul.f32 %v509_v33, %v7308_v30  ;;  %v566_v51 = vmul.f32 %v505_v34, %v7308_v30  ;;  %v569_v52 = vmul.f32 %v517_v35, %v7308_v30  ;;  %v568_v53 = vmul.f32 %v513_v36, %v7308_v30  ;;  %v5990_v33 = vld [vmem:[%s7189_s24 + $0x248] ss:$16 sps:$4 sm:$0xff]   ;;  %v5995_v34 = vld [vmem:[%s7189_s24 + $0x264] ss:$16 sps:$4 sm:$0xff]   ;;  %v5998_v35 = vld [vmem:[%s7189_s24 + $0x26c] ss:$16 sps:$4 sm:$0xff]  }
 0x14b   : > { %v573_v58 = vmul.f32 %v533_v41, %v7308_v30  ;;  %v572_v60 = vmul.f32 %v529_v43, %v7308_v30  ;;  %v5993_v36 = vld [vmem:[%s7189_s24 + $0x260] ss:$16 sps:$4 sm:$0xff]   ;;  %v6002_v41 = vld [vmem:[%s7189_s24 + $0x288] ss:$16 sps:$4 sm:$0xff]   ;;  %v6010_v43 = vld [vmem:[%s7189_s24 + $0x2ac] ss:$16 sps:$4 sm:$0xff]  }
 0x14e   : > { %v7334_v49 = vpop.permute.xlu0 %583 }
 0x14f   : > { %v731_v54 = vmul.f32 %v673_v37, %v7334_v49  ;;  %v730_v55 = vmul.f32 %v669_v38, %v7334_v49  ;;  %v733_v56 = vmul.f32 %v681_v39, %v7334_v49  ;;  %v732_v57 = vmul.f32 %v677_v40, %v7334_v49  ;;  %v5996_v37 = vld [vmem:[%s7189_s24 + $0x268] ss:$16 sps:$4 sm:$0xff]   ;;  %v6001_v38 = vld [vmem:[%s7189_s24 + $0x284] ss:$16 sps:$4 sm:$0xff]   ;;  %v6004_v39 = vld [vmem:[%s7189_s24 + $0x28c] ss:$16 sps:$4 sm:$0xff]  }
 0x150   : > { %v737_v59 = vmul.f32 %v697_v42, %v7334_v49  ;;  %v736_v61 = vmul.f32 %v693_v44, %v7334_v49  ;;  %v5999_v40 = vld [vmem:[%s7189_s24 + $0x280] ss:$16 sps:$4 sm:$0xff]   ;;  %v6007_v42 = vld [vmem:[%s7189_s24 + $0x2a4] ss:$16 sps:$4 sm:$0xff]  }
 0x151   : > { %v747_v62 = vadd.f32 %v731_v54, %v567_v50  ;;  %v746_v63 = vadd.f32 %v730_v55, %v566_v51  ;;  %v749_v0 = vadd.f32 %v733_v56, %v569_v52  ;;  %v748_v1 = vadd.f32 %v732_v57, %v568_v53  ;;  %v6005_v44 = vld [vmem:[%s7189_s24 + $0x2a0] ss:$16 sps:$4 sm:$0xff]   ;;  %v6016_v50 = vld [vmem:[%s7189_s24 + $0x2cc] ss:$16 sps:$4 sm:$0xff]   ;;  %v6014_v52 = vld [vmem:[%s7189_s24 + $0x2c8] ss:$16 sps:$4 sm:$0xff]  }
 0x152   : > { %v753_v2 = vadd.f32 %v737_v59, %v573_v58  ;;  %v752_v3 = vadd.f32 %v736_v61, %v572_v60  ;;  %v6011_v51 = vld [vmem:[%s7189_s24 + $0x2c0] ss:$16 sps:$4 sm:$0xff]   ;;  %v7381_v53 = vld [vmem:[#allocation4 + $0x8] sm:$0xff]  ;;  %v6019_v58 = vld [vmem:[%s7189_s24 + $0x2e4] ss:$16 sps:$4 sm:$0xff]  }
 0x153   : > { %v847_v4 = vadd.f32 %v773_v31, %v747_v62  ;;  %v846_v8 = vadd.f32 %v769_v32, %v746_v63  ;;  %v7350_v17 = vadd.f32 %v777_v46, %v748_v1  ;;  %v849_v19 = vadd.f32 %v781_v45, %v749_v0  ;;  %v5992_v31 = vld [vmem:[%s7189_s24 + $0x24c] ss:$16 sps:$4 sm:$0xff]   ;;  %v5987_v32 = vld [vmem:[%s7189_s24 + $0x240] ss:$16 sps:$4 sm:$0xff]   ;;  %v6008_v46 = vld [vmem:[%s7189_s24 + $0x2a8] ss:$16 sps:$4 sm:$0xff]  }
 0x154   : > { %v7352_v20 = vadd.f32 %v797_v47, %v753_v2  ;;  %v7354_v21 = vadd.f32 %v793_v48, %v752_v3  ;;  %v411_v45 = vld [vmem:[#allocation2 + $0x10] sm:$0xff]  ;;  %v6022_v59 = vld [vmem:[%s7189_s24 + $0x2ec] ss:$16 sps:$4 sm:$0xff]   ;;  %v6020_v63 = vld [vmem:[%s7189_s24 + $0x2e8] ss:$16 sps:$4 sm:$0xff]   ;;  %v813_v2 = vrot.slane %v7381_v53, %v7282_v13 }
 0x155   : > { %v863_v22 = vpack.c.bf16 %v847_v4, %v847_v4  ;;  %v862_v23 = vpack.c.bf16 %v846_v8, %v846_v8  ;;  %v865_v28 = vpack.c.bf16 %v849_v19, %v849_v19  ;;  %v469_v47 = vrot.slane %v411_v45, %v7278_v11  ;;  %v6013_v48 = vld [vmem:[%s7189_s24 + $0x2c4] ss:$16 sps:$4 sm:$0xff]   ;;  %v6017_v62 = vld [vmem:[%s7189_s24 + $0x2e0] ss:$16 sps:$4 sm:$0xff]  }
 0x156   : > { %v633_v55 = vrot.slane %v411_v45, %v7284_v14  ;;  %v465_v56 = vrot.slane %v411_v45, %v7280_v12  ;;  %v629_v61 = vrot.slane %v411_v45, %v7286_v15  ;;  %v609_v45 = vrot.slane %v7288_v16, %v7282_v13 }
 0x157   : > { %4004 = vmatprep.mubr.bf16.mxu0 %v863_v22  ;;  %4332 = vmatprep.mubr.bf16.mxu1 %v863_v22  ;;  %v549_v54 = vrot.slane %v469_v47, %v7272_v7  ;;  %v809_v22 = vrot.slane %v7381_v53, %v7274_v9  ;;  %v6055_v47 = vld [vmem:[%s7189_s24 + $0x3a4] ss:$16 sps:$4 sm:$0xff]  }
 0x158   : > { %4005 = vmatmul.mubr.bf16.vlgmr.msra.gmra.mrb[0].mxu0 %v862_v23  ;;  %4333 = vmatmul.mubr.bf16.vlgmr.msra.gmra.mrb[0].mxu1 %v862_v23  ;;  %v713_v57 = vrot.slane %v633_v55, %v7276_v10  ;;  %v545_v60 = vrot.slane %v465_v56, %v7272_v7  ;;  %v709_v3 = vrot.slane %v629_v61, %v7276_v10  ;;  %v6023_v23 = vld [vmem:[%s7189_s24 + $0x300] ss:$16 sps:$4 sm:$0xff]   ;;  %v6064_v55 = vld [vmem:[%s7189_s24 + $0x3cc] ss:$16 sps:$4 sm:$0xff]  }
 0x159   : > { %4014 = vmatpush1.bf16.msra.mxu0 %v5975_v5  ;;  %4342 = vmatpush1.bf16.msra.mxu1 %v5978_v6  ;;  %v577_v0 = vmul.f32 %v549_v54, %v7308_v30  ;;  %v6025_v5 = vld [vmem:[%s7189_s24 + $0x304] ss:$16 sps:$4 sm:$0xff]   ;;  %v6028_v6 = vld [vmem:[%s7189_s24 + $0x30c] ss:$16 sps:$4 sm:$0xff]   ;;  %v6059_v56 = vld [vmem:[%s7189_s24 + $0x3c0] ss:$16 sps:$4 sm:$0xff]  }
 0x15a   : > { %4045 = vmatprep.mubr.bf16.mxu0 %v865_v28  ;;  %4373 = vmatprep.mubr.bf16.mxu1 %v865_v28  ;;  %v741_v1 = vmul.f32 %v713_v57, %v7334_v49  ;;  %v576_v8 = vmul.f32 %v545_v60, %v7308_v30  ;;  %v740_v19 = vmul.f32 %v709_v3, %v7334_v49  ;;  %v6034_v28 = vld [vmem:[%s7189_s24 + $0x32c] ss:$16 sps:$4 sm:$0xff]   ;;  %v6062_v57 = vld [vmem:[%s7189_s24 + $0x3c8] ss:$16 sps:$4 sm:$0xff]   ;;  %v6067_v60 = vld [vmem:[%s7189_s24 + $0x3e4] ss:$16 sps:$4 sm:$0xff]  }
 0x15b   : > { %4015 = vmatprep.subr.bf16.mxu0 %v5983_v24  ;;  %4343 = vmatprep.subr.bf16.mxu1 %v5986_v27  ;;  %v6026_v24 = vld [vmem:[%s7189_s24 + $0x308] ss:$16 sps:$4 sm:$0xff]   ;;  %v6031_v27 = vld [vmem:[%s7189_s24 + $0x324] ss:$16 sps:$4 sm:$0xff]   ;;  %v6070_v61 = vld [vmem:[%s7189_s24 + $0x3ec] ss:$16 sps:$4 sm:$0xff]  }
 0x15c   : > { %v757_v4 = vadd.f32 %v741_v1, %v577_v0  ;;  %v789_v1 = vrot.slane %v7291_v18, %v7286_v15  ;;  %v6076_v3 = vld [vmem:[%s7189_s24 + $0x40c] ss:$16 sps:$4 sm:$0xff]   ;;  %v864_v18 = vpack.c.bf16 %v7350_v17, %v7350_v17 }
 0x15d   : > { %4016 = vmatpush1.bf16.msra.mxu0 %v5981_v25  ;;  %4344 = vmatpush1.bf16.msra.mxu1 %v5984_v26  ;;  %v756_v26 = vadd.f32 %v740_v19, %v576_v8  ;;  %v6079_v8 = vld [vmem:[%s7189_s24 + $0x424] ss:$16 sps:$4 sm:$0xff]   ;;  %v6082_v19 = vld [vmem:[%s7189_s24 + $0x42c] ss:$16 sps:$4 sm:$0xff]  }
 0x15e   : > { %4017 = vmatprep.subr.bf16.mxu0 %v5989_v29  ;;  %4345 = vmatprep.subr.bf16.mxu1 %v5992_v31  ;;  %v7406_v25 = vadd.f32 %v813_v2, %v757_v4  ;;  %v6029_v31 = vld [vmem:[%s7189_s24 + $0x320] ss:$16 sps:$4 sm:$0xff]   ;;  %v6073_v2 = vld [vmem:[%s7189_s24 + $0x404] ss:$16 sps:$4 sm:$0xff]   ;;  %v6088_v17 = vld [vmem:[%s7189_s24 + $0x44c] ss:$16 sps:$4 sm:$0xff]  }
 0x15f   : > { %v7410_v29 = vadd.f32 %v809_v22, %v756_v26  ;;  %v6071_v4 = vld [vmem:[%s7189_s24 + $0x400] ss:$16 sps:$4 sm:$0xff]   ;;  %v6085_v26 = vld [vmem:[%s7189_s24 + $0x444] ss:$16 sps:$4 sm:$0xff]  }
 0x161   : > { %4018 = vmatpush1.bf16.msra.mxu0 %v5987_v32  ;;  %4346 = vmatpush1.bf16.msra.mxu1 %v5990_v33  ;;  %v6032_v32 = vld [vmem:[%s7189_s24 + $0x328] ss:$16 sps:$4 sm:$0xff]   ;;  %v6037_v33 = vld [vmem:[%s7189_s24 + $0x344] ss:$16 sps:$4 sm:$0xff]  }
 0x162   : > { %4019 = vmatprep.subr.bf16.mxu0 %v5995_v34  ;;  %4347 = vmatprep.subr.bf16.mxu1 %v5998_v35  ;;  %v6040_v34 = vld [vmem:[%s7189_s24 + $0x34c] ss:$16 sps:$4 sm:$0xff]   ;;  %v6035_v35 = vld [vmem:[%s7189_s24 + $0x340] ss:$16 sps:$4 sm:$0xff]  }
 0x165   : > { %4020 = vmatpush1.bf16.msra.mxu0 %v5993_v36  ;;  %4348 = vmatpush1.bf16.msra.mxu1 %v5996_v37  ;;  %v6038_v36 = vld [vmem:[%s7189_s24 + $0x348] ss:$16 sps:$4 sm:$0xff]   ;;  %v6043_v37 = vld [vmem:[%s7189_s24 + $0x364] ss:$16 sps:$4 sm:$0xff]  }
 0x166   : > { %4021 = vmatprep.subr.bf16.mxu0 %v6001_v38  ;;  %4349 = vmatprep.subr.bf16.mxu1 %v6004_v39  ;;  %v6046_v38 = vld [vmem:[%s7189_s24 + $0x36c] ss:$16 sps:$4 sm:$0xff]   ;;  %v6041_v39 = vld [vmem:[%s7189_s24 + $0x360] ss:$16 sps:$4 sm:$0xff]  }
 0x169   : > { %4022 = vmatpush1.bf16.msra.mxu0 %v5999_v40  ;;  %4350 = vmatpush1.bf16.msra.mxu1 %v6002_v41  ;;  %v6044_v40 = vld [vmem:[%s7189_s24 + $0x368] ss:$16 sps:$4 sm:$0xff]   ;;  %v6049_v41 = vld [vmem:[%s7189_s24 + $0x384] ss:$16 sps:$4 sm:$0xff]  }
 0x16a   : > { %4023 = vmatprep.subr.bf16.mxu0 %v6007_v42  ;;  %4351 = vmatprep.subr.bf16.mxu1 %v6010_v43  ;;  %v6052_v42 = vld [vmem:[%s7189_s24 + $0x38c] ss:$16 sps:$4 sm:$0xff]   ;;  %v6047_v43 = vld [vmem:[%s7189_s24 + $0x380] ss:$16 sps:$4 sm:$0xff]  }
 0x16d   : > { %4024 = vmatpush1.bf16.msra.mxu0 %v6005_v44  ;;  %4352 = vmatpush1.bf16.msra.mxu1 %v6008_v46  ;;  %v6050_v44 = vld [vmem:[%s7189_s24 + $0x388] ss:$16 sps:$4 sm:$0xff]   ;;  %v445_v46 = vrot.slane %v7288_v16, %v7274_v9  ;;  %v6061_v16 = vld [vmem:[%s7189_s24 + $0x3c4] ss:$16 sps:$4 sm:$0xff]  }
 0x16e   : > { %4025 = vmatprep.subr.bf16.mxu0 %v6013_v48  ;;  %4353 = vmatprep.subr.bf16.mxu1 %v6016_v50  ;;  %v6058_v48 = vld [vmem:[%s7189_s24 + $0x3ac] ss:$16 sps:$4 sm:$0xff]   ;;  %v6053_v50 = vld [vmem:[%s7189_s24 + $0x3a0] ss:$16 sps:$4 sm:$0xff]  }
 0x16f   : > { %v525_v54 = vrot.slane %v445_v46, %v7272_v7 }
 0x171   : > { %4026 = vmatpush1.bf16.msra.mxu0 %v6011_v51  ;;  %4354 = vmatpush1.bf16.msra.mxu1 %v6014_v52  ;;  %v6056_v51 = vld [vmem:[%s7189_s24 + $0x3a8] ss:$16 sps:$4 sm:$0xff]   ;;  %v689_v52 = vrot.slane %v609_v45, %v7276_v10 }
 0x172   : > { %4027 = vmatprep.subr.bf16.mxu0 %v6019_v58  ;;  %4355 = vmatprep.subr.bf16.mxu1 %v6022_v59  ;;  %v571_v59 = vmul.f32 %v525_v54, %v7308_v30 }
 0x173   : > { %v735_v58 = vmul.f32 %v689_v52, %v7334_v49 }
 0x175   : > { %4028 = vmatpush1.bf16.msra.mxu0 %v6017_v62  ;;  %4356 = vmatpush1.bf16.msra.mxu1 %v6020_v63  ;;  %v6065_v62 = vld [vmem:[%s7189_s24 + $0x3e0] ss:$16 sps:$4 sm:$0xff]   ;;  %v6068_v63 = vld [vmem:[%s7189_s24 + $0x3e8] ss:$16 sps:$4 sm:$0xff]   ;;  %v751_v0 = vadd.f32 %v735_v58, %v571_v59  ;;  %v829_v59 = vrot.slane %v7381_v53, %v7284_v14 }
 0x176   : > { %4029 = vmatprep.subr.bf16.mxu0 %v6025_v5  ;;  %4357 = vmatprep.subr.bf16.mxu1 %v6028_v6  ;;  %v6074_v6 = vld [vmem:[%s7189_s24 + $0x408] ss:$16 sps:$4 sm:$0xff]  }
 0x177   : > { %v851_v5 = vadd.f32 %v789_v1, %v751_v0 }
 0x179   : > { %4030 = vmatpush1.bf16.msra.mxu0 %v6023_v23  ;;  %4358 = vmatpush1.bf16.msra.mxu1 %v6026_v24  ;;  %v867_v22 = vpack.c.bf16 %v851_v5, %v851_v5  ;;  %v6077_v23 = vld [vmem:[%s7189_s24 + $0x420] ss:$16 sps:$4 sm:$0xff]   ;;  %v6080_v24 = vld [vmem:[%s7189_s24 + $0x428] ss:$16 sps:$4 sm:$0xff]  }
 0x17a   : > { %4031 = vmatprep.subr.bf16.mxu0 %v6031_v27  ;;  %4359 = vmatprep.subr.bf16.mxu1 %v6034_v28  ;;  %v6083_v27 = vld [vmem:[%s7189_s24 + $0x440] ss:$16 sps:$4 sm:$0xff]   ;;  %v6086_v28 = vld [vmem:[%s7189_s24 + $0x448] ss:$16 sps:$4 sm:$0xff]  }
 0x17b   : > { %v6119_v5 = vld [vmem:[%s7189_s24 + $0x500] ss:$16 sps:$4 sm:$0xff]  }
 0x17d   : > { %4032 = vmatpush1.bf16.msra.mxu0 %v6029_v31  ;;  %4360 = vmatpush1.bf16.msra.mxu1 %v6032_v32  ;;  %v6091_v31 = vld [vmem:[%s7189_s24 + $0x464] ss:$16 sps:$4 sm:$0xff]   ;;  %v6089_v32 = vld [vmem:[%s7189_s24 + $0x460] ss:$16 sps:$4 sm:$0xff]  }
 0x17e   : > { %4033 = vmatprep.subr.bf16.mxu0 %v6037_v33  ;;  %4361 = vmatprep.subr.bf16.mxu1 %v6040_v34  ;;  %v6094_v33 = vld [vmem:[%s7189_s24 + $0x46c] ss:$16 sps:$4 sm:$0xff]   ;;  %v6092_v34 = vld [vmem:[%s7189_s24 + $0x468] ss:$16 sps:$4 sm:$0xff]  }
 0x181   : > { %4034 = vmatpush1.bf16.msra.mxu0 %v6035_v35  ;;  %4362 = vmatpush1.bf16.msra.mxu1 %v6038_v36  ;;  %v6097_v35 = vld [vmem:[%s7189_s24 + $0x484] ss:$16 sps:$4 sm:$0xff]   ;;  %v6095_v36 = vld [vmem:[%s7189_s24 + $0x480] ss:$16 sps:$4 sm:$0xff]  }
 0x182   : > { %4035 = vmatprep.subr.bf16.mxu0 %v6043_v37  ;;  %4363 = vmatprep.subr.bf16.mxu1 %v6046_v38  ;;  %v6100_v37 = vld [vmem:[%s7189_s24 + $0x48c] ss:$16 sps:$4 sm:$0xff]   ;;  %v6098_v38 = vld [vmem:[%s7189_s24 + $0x488] ss:$16 sps:$4 sm:$0xff]  }
 0x185   : > { %4036 = vmatpush1.bf16.msra.mxu0 %v6041_v39  ;;  %4364 = vmatpush1.bf16.msra.mxu1 %v6044_v40  ;;  %v6103_v39 = vld [vmem:[%s7189_s24 + $0x4a4] ss:$16 sps:$4 sm:$0xff]   ;;  %v6101_v40 = vld [vmem:[%s7189_s24 + $0x4a0] ss:$16 sps:$4 sm:$0xff]  }
 0x186   : > { %4037 = vmatprep.subr.bf16.mxu0 %v6049_v41  ;;  %4365 = vmatprep.subr.bf16.mxu1 %v6052_v42  ;;  %v6106_v41 = vld [vmem:[%s7189_s24 + $0x4ac] ss:$16 sps:$4 sm:$0xff]  }
 0x187   : > { %v412_v42 = vld [vmem:[#allocation2 + $0x18] sm:$0xff] }
 0x188   : > { %v485_v45 = vrot.slane %v412_v42, %v7278_v11  ;;  %v649_v46 = vrot.slane %v412_v42, %v7284_v14  ;;  %v645_v54 = vrot.slane %v412_v42, %v7286_v15  ;;  %v6116_v14 = vld [vmem:[%s7189_s24 + $0x4e8] ss:$16 sps:$4 sm:$0xff]  }
 0x189   : > { %4038 = vmatpush1.bf16.msra.mxu0 %v6047_v43  ;;  %4366 = vmatpush1.bf16.msra.mxu1 %v6050_v44  ;;  %v6104_v43 = vld [vmem:[%s7189_s24 + $0x4a8] ss:$16 sps:$4 sm:$0xff]   ;;  %v6109_v44 = vld [vmem:[%s7189_s24 + $0x4c4] ss:$16 sps:$4 sm:$0xff]  }
 0x18a   : > { %4039 = vmatprep.subr.bf16.mxu0 %v6055_v47  ;;  %4367 = vmatprep.subr.bf16.mxu1 %v6058_v48  ;;  %v481_v47 = vrot.slane %v412_v42, %v7280_v12  ;;  %v6107_v48 = vld [vmem:[%s7189_s24 + $0x4c0] ss:$16 sps:$4 sm:$0xff]   ;;  %v729_v52 = vrot.slane %v649_v46, %v7276_v10  ;;  %v6152_v46 = vld [vmem:[%s7189_s24 + $0x5a8] ss:$16 sps:$4 sm:$0xff]  }
 0x18c   : > { %v745_v58 = vmul.f32 %v729_v52, %v7334_v49 }
 0x18d   : > { %4040 = vmatpush1.bf16.msra.mxu0 %v6053_v50  ;;  %4368 = vmatpush1.bf16.msra.mxu1 %v6056_v51  ;;  %v6112_v50 = vld [vmem:[%s7189_s24 + $0x4cc] ss:$16 sps:$4 sm:$0xff]   ;;  %v565_v51 = vrot.slane %v485_v45, %v7272_v7 }
 0x18e   : > { %4041 = vmatprep.subr.bf16.mxu0 %v6061_v16  ;;  %4369 = vmatprep.subr.bf16.mxu1 %v6064_v55  ;;  %v561_v16 = vrot.slane %v481_v47, %v7272_v7  ;;  %v6110_v55 = vld [vmem:[%s7189_s24 + $0x4c8] ss:$16 sps:$4 sm:$0xff]   ;;  %v6157_v47 = vld [vmem:[%s7189_s24 + $0x5c4] ss:$16 sps:$4 sm:$0xff]  }
 0x190   : > { %v580_v0 = vmul.f32 %v561_v16, %v7308_v30  ;;  %v6163_v16 = vld [vmem:[%s7189_s24 + $0x5e4] ss:$16 sps:$4 sm:$0xff]  }
 0x191   : > { %4042 = vmatpush1.bf16.msra.mxu0 %v6059_v56  ;;  %4370 = vmatpush1.bf16.msra.mxu1 %v6062_v57  ;;  %v6115_v56 = vld [vmem:[%s7189_s24 + $0x4e4] ss:$16 sps:$4 sm:$0xff]   ;;  %v581_v57 = vmul.f32 %v565_v51, %v7308_v30  ;;  %v6160_v51 = vld [vmem:[%s7189_s24 + $0x5cc] ss:$16 sps:$4 sm:$0xff]  }
 0x192   : > { %4043 = vmatprep.subr.bf16.mxu0 %v6067_v60  ;;  %4371 = vmatprep.subr.bf16.mxu1 %v6070_v61  ;;  %v6113_v60 = vld [vmem:[%s7189_s24 + $0x4e0] ss:$16 sps:$4 sm:$0xff]   ;;  %v6118_v61 = vld [vmem:[%s7189_s24 + $0x4ec] ss:$16 sps:$4 sm:$0xff]  }
 0x195   : > { %4044 = vmatpush1.bf16.msra.mxu0 %v6065_v62  ;;  %4372 = vmatpush1.bf16.msra.mxu1 %v6068_v63  ;;  %v725_v62 = vrot.slane %v645_v54, %v7276_v10  ;;  %v761_v63 = vadd.f32 %v745_v58, %v581_v57  ;;  %v6158_v54 = vld [vmem:[%s7189_s24 + $0x5c8] ss:$16 sps:$4 sm:$0xff]   ;;  %v6161_v58 = vld [vmem:[%s7189_s24 + $0x5e0] ss:$16 sps:$4 sm:$0xff]  }
 0x196   : > { %4054 = vmatprep.subr.bf16.mxu0 %v6073_v2  ;;  %4382 = vmatprep.subr.bf16.mxu1 %v6076_v3  ;;  %v825_v2 = vrot.slane %v7381_v53, %v7278_v11  ;;  %v6121_v3 = vld [vmem:[%s7189_s24 + $0x504] ss:$16 sps:$4 sm:$0xff]   ;;  %v6122_v11 = vld [vmem:[%s7189_s24 + $0x508] ss:$16 sps:$4 sm:$0xff]  }
 0x197   : > { %v744_v1 = vmul.f32 %v725_v62, %v7334_v49  ;;  %v6127_v53 = vld [vmem:[%s7189_s24 + $0x524] ss:$16 sps:$4 sm:$0xff]  }
 0x198   : > { %4046 = vmatmul.mubr.bf16.vlgmr.msra.gmra.mrb[0].mxu0 %v864_v18  ;;  %4374 = vmatmul.mubr.bf16.vlgmr.msra.gmra.mrb[0].mxu1 %v864_v18  ;;  %v6125_v18 = vld [vmem:[%s7189_s24 + $0x520] ss:$16 sps:$4 sm:$0xff]   ;;  %v6169_v62 = vld [vmem:[%s7189_s24 + $0x604] ss:$16 sps:$4 sm:$0xff]  }
 0x199   : > { %4055 = vmatpush1.bf16.msra.mxu0 %v6071_v4  ;;  %4086 = vmatprep.mubr.bf16.mxu0 %v867_v22  ;;  %v7499_v4 = vadd.f32 %v829_v59, %v761_v63  ;;  %v6166_v59 = vld [vmem:[%s7189_s24 + $0x5ec] ss:$16 sps:$4 sm:$0xff]  }
 0x19a   : > { %4383 = vmatpush1.bf16.msra.mxu1 %v6074_v6  ;;  %4414 = vmatprep.mubr.bf16.mxu1 %v867_v22  ;;  %v6124_v6 = vld [vmem:[%s7189_s24 + $0x50c] ss:$16 sps:$4 sm:$0xff]  }
 0x19b   : > { %4056 = vmatprep.subr.bf16.mxu0 %v6079_v8  ;;  %4384 = vmatprep.subr.bf16.mxu1 %v6082_v19  ;;  %v760_v8 = vadd.f32 %v744_v1, %v580_v0  ;;  %v6130_v22 = vld [vmem:[%s7189_s24 + $0x52c] ss:$16 sps:$4 sm:$0xff]   ;;  %v6167_v0 = vld [vmem:[%s7189_s24 + $0x600] ss:$16 sps:$4 sm:$0xff]   ;;  %v6170_v1 = vld [vmem:[%s7189_s24 + $0x608] ss:$16 sps:$4 sm:$0xff]  }
 0x19c   : > { %v6172_v63 = vld [vmem:[%s7189_s24 + $0x60c] ss:$16 sps:$4 sm:$0xff]  }
 0x19d   : > { %4057 = vmatpush1.bf16.msra.mxu0 %v6077_v23  ;;  %v7503_v19 = vadd.f32 %v825_v2, %v760_v8  ;;  %v6128_v23 = vld [vmem:[%s7189_s24 + $0x528] ss:$16 sps:$4 sm:$0xff]   ;;  %v6175_v2 = vld [vmem:[%s7189_s24 + $0x624] ss:$16 sps:$4 sm:$0xff]  }
 0x19e   : > { %4385 = vmatpush1.bf16.msra.mxu1 %v6080_v24  ;;  %4058 = vmatprep.subr.bf16.mxu0 %v6085_v26  ;;  %v6133_v24 = vld [vmem:[%s7189_s24 + $0x544] ss:$16 sps:$4 sm:$0xff]   ;;  %v6131_v26 = vld [vmem:[%s7189_s24 + $0x540] ss:$16 sps:$4 sm:$0xff]   ;;  %v6176_v8 = vld [vmem:[%s7189_s24 + $0x628] ss:$16 sps:$4 sm:$0xff]  }
 0x19f   : > { %4386 = vmatprep.subr.bf16.mxu1 %v6088_v17  ;;  %v6136_v17 = vld [vmem:[%s7189_s24 + $0x54c] ss:$16 sps:$4 sm:$0xff]  }
 0x1a1   : > { %4059 = vmatpush1.bf16.msra.mxu0 %v6083_v27  ;;  %v6134_v27 = vld [vmem:[%s7189_s24 + $0x548] ss:$16 sps:$4 sm:$0xff]  }
 0x1a2   : > { %4387 = vmatpush1.bf16.msra.mxu1 %v6086_v28  ;;  %4060 = vmatprep.subr.bf16.mxu0 %v6091_v31  ;;  %v6139_v28 = vld [vmem:[%s7189_s24 + $0x564] ss:$16 sps:$4 sm:$0xff]   ;;  %v6137_v31 = vld [vmem:[%s7189_s24 + $0x560] ss:$16 sps:$4 sm:$0xff]  }
 0x1a3   : > { %4388 = vmatprep.subr.bf16.mxu1 %v6094_v33  ;;  %v6140_v33 = vld [vmem:[%s7189_s24 + $0x568] ss:$16 sps:$4 sm:$0xff]  }
 0x1a5   : > { %4061 = vmatpush1.bf16.msra.mxu0 %v6089_v32  ;;  %v6142_v32 = vld [vmem:[%s7189_s24 + $0x56c] ss:$16 sps:$4 sm:$0xff]  }
 0x1a6   : > { %4389 = vmatpush1.bf16.msra.mxu1 %v6092_v34  ;;  %4062 = vmatprep.subr.bf16.mxu0 %v6097_v35  ;;  %v6145_v34 = vld [vmem:[%s7189_s24 + $0x584] ss:$16 sps:$4 sm:$0xff]   ;;  %v6679_v35 = vld [vmem:[#allocation2 + $0x8] sm:$0xff] }
 0x1a7   : > { %4390 = vmatprep.subr.bf16.mxu1 %v6100_v37  ;;  %v6143_v37 = vld [vmem:[%s7189_s24 + $0x580] ss:$16 sps:$4 sm:$0xff]  }
 0x1a9   : > { %4063 = vmatpush1.bf16.msra.mxu0 %v6095_v36  ;;  %v605_v36 = vrot.slane %v6679_v35, %v7276_v10 }
 0x1aa   : > { %4391 = vmatpush1.bf16.msra.mxu1 %v6098_v38  ;;  %4064 = vmatprep.subr.bf16.mxu0 %v6103_v39  ;;  %v6148_v38 = vld [vmem:[%s7189_s24 + $0x58c] ss:$16 sps:$4 sm:$0xff]   ;;  %v441_v39 = vrot.slane %v6679_v35, %v7272_v7  ;;  %v6200_v35 = vld [vmem:[%s7189_s24 + $0x6a8] ss:$16 sps:$4 sm:$0xff]  }
 0x1ab   : > { %4392 = vmatprep.subr.bf16.mxu1 %v6106_v41  ;;  %v6151_v41 = vld [vmem:[%s7189_s24 + $0x5a4] ss:$16 sps:$4 sm:$0xff]   ;;  %v685_v42 = vrot.slane %v605_v36, %v7276_v10 }
 0x1ac   : > { %v521_v45 = vrot.slane %v441_v39, %v7272_v7  ;;  %v6205_v36 = vld [vmem:[%s7189_s24 + $0x6c4] ss:$16 sps:$4 sm:$0xff]   ;;  %v6206_v39 = vld [vmem:[%s7189_s24 + $0x6c8] ss:$16 sps:$4 sm:$0xff]  }
 0x1ad   : > { %4065 = vmatpush1.bf16.msra.mxu0 %v6101_v40  ;;  %v6146_v40 = vld [vmem:[%s7189_s24 + $0x588] ss:$16 sps:$4 sm:$0xff]  }
 0x1ae   : > { %4393 = vmatpush1.bf16.msra.mxu1 %v6104_v43  ;;  %4066 = vmatprep.subr.bf16.mxu0 %v6109_v44  ;;  %v6149_v43 = vld [vmem:[%s7189_s24 + $0x5a0] ss:$16 sps:$4 sm:$0xff]   ;;  %v6154_v44 = vld [vmem:[%s7189_s24 + $0x5ac] ss:$16 sps:$4 sm:$0xff]   ;;  %v570_v52 = vmul.f32 %v521_v45, %v7308_v30 }
 0x1af   : > { %4394 = vmatprep.subr.bf16.mxu1 %v6112_v50  ;;  %v6155_v50 = vld [vmem:[%s7189_s24 + $0x5c0] ss:$16 sps:$4 sm:$0xff]  }
 0x1b0   : > { %v6215_v45 = vld [vmem:[%s7189_s24 + $0x700] ss:$16 sps:$4 sm:$0xff]  }
 0x1b1   : > { %4067 = vmatpush1.bf16.msra.mxu0 %v6107_v48  ;;  %v734_v48 = vmul.f32 %v685_v42, %v7334_v49  ;;  %v6214_v42 = vld [vmem:[%s7189_s24 + $0x6ec] ss:$16 sps:$4 sm:$0xff]  }
 0x1b2   : > { %4395 = vmatpush1.bf16.msra.mxu1 %v6110_v55  ;;  %4068 = vmatprep.subr.bf16.mxu0 %v6115_v56  ;;  %v6680_v56 = vld [vmem:[#allocation4] sm:$0xff] }
 0x1b3   : > { %4396 = vmatprep.subr.bf16.mxu1 %v6118_v61  ;;  %v750_v55 = vadd.f32 %v734_v48, %v570_v52  ;;  %v785_v57 = vrot.slane %v6680_v56, %v7280_v12  ;;  %v6223_v48 = vld [vmem:[%s7189_s24 + $0x724] ss:$16 sps:$4 sm:$0xff]   ;;  %v6224_v52 = vld [vmem:[%s7189_s24 + $0x728] ss:$16 sps:$4 sm:$0xff]  }
 0x1b4   : > { %v6230_v56 = vld [vmem:[%s7189_s24 + $0x748] ss:$16 sps:$4 sm:$0xff]  }
 0x1b5   : > { %4069 = vmatpush1.bf16.msra.mxu0 %v6113_v60  ;;  %v6164_v60 = vld [vmem:[%s7189_s24 + $0x5e8] ss:$16 sps:$4 sm:$0xff]   ;;  %v850_v61 = vadd.f32 %v785_v57, %v750_v55  ;;  %v6232_v55 = vld [vmem:[%s7189_s24 + $0x74c] ss:$16 sps:$4 sm:$0xff]   ;;  %v6235_v57 = vld [vmem:[%s7189_s24 + $0x764] ss:$16 sps:$4 sm:$0xff]  }
 0x1b6   : > { %4397 = vmatpush1.bf16.msra.mxu1 %v6116_v14  ;;  %4070 = vmatprep.subr.bf16.mxu0 %v6121_v3  ;;  %v869_v3 = vpack.c.bf16 %v7352_v20, %v7352_v20  ;;  %v6179_v20 = vld [vmem:[%s7189_s24 + $0x640] ss:$16 sps:$4 sm:$0xff]  }
 0x1b7   : > { %4398 = vmatprep.subr.bf16.mxu1 %v6124_v6  ;;  %v866_v14 = vpack.c.bf16 %v850_v61, %v850_v61  ;;  %v6178_v6 = vld [vmem:[%s7189_s24 + $0x62c] ss:$16 sps:$4 sm:$0xff]   ;;  %v6241_v61 = vld [vmem:[%s7189_s24 + $0x784] ss:$16 sps:$4 sm:$0xff]  }
 0x1b9   : > { %4071 = vmatpush1.bf16.msra.mxu0 %v6119_v5  ;;  %v6173_v5 = vld [vmem:[%s7189_s24 + $0x620] ss:$16 sps:$4 sm:$0xff]  }
 0x1ba   : > { %4399 = vmatpush1.bf16.msra.mxu1 %v6122_v11  ;;  %4072 = vmatprep.subr.bf16.mxu0 %v6127_v53  ;;  %v6181_v11 = vld [vmem:[%s7189_s24 + $0x644] ss:$16 sps:$4 sm:$0xff]   ;;  %v6184_v53 = vld [vmem:[%s7189_s24 + $0x64c] ss:$16 sps:$4 sm:$0xff]  }
 0x1bb   : > { %4400 = vmatprep.subr.bf16.mxu1 %v6130_v22  ;;  %v6187_v22 = vld [vmem:[%s7189_s24 + $0x664] ss:$16 sps:$4 sm:$0xff]  }
 0x1bd   : > { %4073 = vmatpush1.bf16.msra.mxu0 %v6125_v18  ;;  %v6182_v18 = vld [vmem:[%s7189_s24 + $0x648] ss:$16 sps:$4 sm:$0xff]  }
 0x1be   : > { %4401 = vmatpush1.bf16.msra.mxu1 %v6128_v23  ;;  %4074 = vmatprep.subr.bf16.mxu0 %v6133_v24  ;;  %v6185_v23 = vld [vmem:[%s7189_s24 + $0x660] ss:$16 sps:$4 sm:$0xff]   ;;  %v6190_v24 = vld [vmem:[%s7189_s24 + $0x66c] ss:$16 sps:$4 sm:$0xff]  }
 0x1bf   : > { %4402 = vmatprep.subr.bf16.mxu1 %v6136_v17  ;;  %v6193_v17 = vld [vmem:[%s7189_s24 + $0x684] ss:$16 sps:$4 sm:$0xff]  }
 0x1c1   : > { %4075 = vmatpush1.bf16.msra.mxu0 %v6131_v26  ;;  %v6188_v26 = vld [vmem:[%s7189_s24 + $0x668] ss:$16 sps:$4 sm:$0xff]  }
 0x1c2   : > { %4403 = vmatpush1.bf16.msra.mxu1 %v6134_v27  ;;  %4076 = vmatprep.subr.bf16.mxu0 %v6139_v28  ;;  %v6191_v27 = vld [vmem:[%s7189_s24 + $0x680] ss:$16 sps:$4 sm:$0xff]   ;;  %v6196_v28 = vld [vmem:[%s7189_s24 + $0x68c] ss:$16 sps:$4 sm:$0xff]  }
 0x1c3   : > { %4404 = vmatprep.subr.bf16.mxu1 %v6142_v32  ;;  %v6199_v32 = vld [vmem:[%s7189_s24 + $0x6a4] ss:$16 sps:$4 sm:$0xff]  }
 0x1c5   : > { %4077 = vmatpush1.bf16.msra.mxu0 %v6137_v31  ;;  %v6194_v31 = vld [vmem:[%s7189_s24 + $0x688] ss:$16 sps:$4 sm:$0xff]  }
 0x1c6   : > { %4405 = vmatpush1.bf16.msra.mxu1 %v6140_v33  ;;  %4078 = vmatprep.subr.bf16.mxu0 %v6145_v34  ;;  %v6197_v33 = vld [vmem:[%s7189_s24 + $0x6a0] ss:$16 sps:$4 sm:$0xff]   ;;  %v6202_v34 = vld [vmem:[%s7189_s24 + $0x6ac] ss:$16 sps:$4 sm:$0xff]  }
 0x1c7   : > { %4406 = vmatprep.subr.bf16.mxu1 %v6148_v38  ;;  %v6208_v38 = vld [vmem:[%s7189_s24 + $0x6cc] ss:$16 sps:$4 sm:$0xff]  }
 0x1c9   : > { %4079 = vmatpush1.bf16.msra.mxu0 %v6143_v37  ;;  %v6203_v37 = vld [vmem:[%s7189_s24 + $0x6c0] ss:$16 sps:$4 sm:$0xff]  }
 0x1ca   : > { %4407 = vmatpush1.bf16.msra.mxu1 %v6146_v40  ;;  %4080 = vmatprep.subr.bf16.mxu0 %v6151_v41  ;;  %v6211_v40 = vld [vmem:[%s7189_s24 + $0x6e4] ss:$16 sps:$4 sm:$0xff]   ;;  %v6209_v41 = vld [vmem:[%s7189_s24 + $0x6e0] ss:$16 sps:$4 sm:$0xff]  }
 0x1cb   : > { %4408 = vmatprep.subr.bf16.mxu1 %v6154_v44  ;;  %v6217_v44 = vld [vmem:[%s7189_s24 + $0x704] ss:$16 sps:$4 sm:$0xff]  }
 0x1cd   : > { %4081 = vmatpush1.bf16.msra.mxu0 %v6149_v43  ;;  %v6212_v43 = vld [vmem:[%s7189_s24 + $0x6e8] ss:$16 sps:$4 sm:$0xff]  }
 0x1ce   : > { %4409 = vmatpush1.bf16.msra.mxu1 %v6152_v46  ;;  %4082 = vmatprep.subr.bf16.mxu0 %v6157_v47  ;;  %v6220_v46 = vld [vmem:[%s7189_s24 + $0x70c] ss:$16 sps:$4 sm:$0xff]   ;;  %v6218_v47 = vld [vmem:[%s7189_s24 + $0x708] ss:$16 sps:$4 sm:$0xff]  }
 0x1cf   : > { %4410 = vmatprep.subr.bf16.mxu1 %v6160_v51  ;;  %v6226_v51 = vld [vmem:[%s7189_s24 + $0x72c] ss:$16 sps:$4 sm:$0xff]  }
 0x1d1   : > { %4083 = vmatpush1.bf16.msra.mxu0 %v6155_v50  ;;  %v6221_v50 = vld [vmem:[%s7189_s24 + $0x720] ss:$16 sps:$4 sm:$0xff]  }
 0x1d2   : > { %4411 = vmatpush1.bf16.msra.mxu1 %v6158_v54  ;;  %4084 = vmatprep.subr.bf16.mxu0 %v6163_v16  ;;  %v6229_v54 = vld [vmem:[%s7189_s24 + $0x744] ss:$16 sps:$4 sm:$0xff]   ;;  %v6227_v16 = vld [vmem:[%s7189_s24 + $0x740] ss:$16 sps:$4 sm:$0xff]  }
 0x1d3   : > { %4412 = vmatprep.subr.bf16.mxu1 %v6166_v59  ;;  %v6238_v59 = vld [vmem:[%s7189_s24 + $0x76c] ss:$16 sps:$4 sm:$0xff]  }
 0x1d5   : > { %4085 = vmatpush1.bf16.msra.mxu0 %v6161_v58  ;;  %v6233_v58 = vld [vmem:[%s7189_s24 + $0x760] ss:$16 sps:$4 sm:$0xff]  }
 0x1d6   : > { %4413 = vmatpush1.bf16.msra.mxu1 %v6164_v60  ;;  %4095 = vmatprep.subr.bf16.mxu0 %v6169_v62  ;;  %v6236_v60 = vld [vmem:[%s7189_s24 + $0x768] ss:$16 sps:$4 sm:$0xff]   ;;  %v6239_v62 = vld [vmem:[%s7189_s24 + $0x780] ss:$16 sps:$4 sm:$0xff]  }
 0x1d7   : > { %4423 = vmatprep.subr.bf16.mxu1 %v6172_v63  ;;  %v6244_v63 = vld [vmem:[%s7189_s24 + $0x78c] ss:$16 sps:$4 sm:$0xff]  }
 0x1d8   : > { %4087 = vmatmul.mubr.bf16.vlgmr.msra.gmra.mrb[0].mxu0 %v866_v14 }
 0x1d9   : > { %4415 = vmatmul.mubr.bf16.vlgmr.msra.gmra.mrb[0].mxu1 %v866_v14  ;;  %4096 = vmatpush1.bf16.msra.mxu0 %v6167_v0  ;;  %v7594_v0 = vld [vmem:[#allocation2 + $0x10] sm:$0xff] }
 0x1da   : > { %4127 = vmatprep.mubr.bf16.mxu0 %v869_v3  ;;  %4424 = vmatpush1.bf16.msra.mxu1 %v6170_v1  ;;  %v625_v1 = vrot.slane %v7594_v0, %v7282_v13  ;;  %v6247_v14 = vld [vmem:[%s7189_s24 + $0x7a4] ss:$16 sps:$4 sm:$0xff]  }
 0x1db   : > { %4455 = vmatprep.mubr.bf16.mxu1 %v869_v3  ;;  %4097 = vmatprep.subr.bf16.mxu0 %v6175_v2  ;;  %v6242_v2 = vld [vmem:[%s7189_s24 + $0x788] ss:$16 sps:$4 sm:$0xff]   ;;  %v461_v3 = vrot.slane %v7594_v0, %v7274_v9 }
 0x1dc   : > { %4425 = vmatprep.subr.bf16.mxu1 %v6178_v6  ;;  %v705_v6 = vrot.slane %v625_v1, %v7276_v10  ;;  %v6299_v1 = vld [vmem:[%s7189_s24 + $0x8c0] ss:$16 sps:$4 sm:$0xff]  }
 0x1dd   : > { %4098 = vmatpush1.bf16.msra.mxu0 %v6173_v5  ;;  %v6250_v5 = vld [vmem:[%s7189_s24 + $0x7ac] ss:$16 sps:$4 sm:$0xff]  }
 0x1de   : > { %4426 = vmatpush1.bf16.msra.mxu1 %v6176_v8  ;;  %4099 = vmatprep.subr.bf16.mxu0 %v6181_v11  ;;  %v6245_v8 = vld [vmem:[%s7189_s24 + $0x7a0] ss:$16 sps:$4 sm:$0xff]   ;;  %v6248_v11 = vld [vmem:[%s7189_s24 + $0x7a8] ss:$16 sps:$4 sm:$0xff]  }
 0x1df   : > { %4427 = vmatprep.subr.bf16.mxu1 %v6184_v53  ;;  %v6253_v53 = vld [vmem:[%s7189_s24 + $0x7c4] ss:$16 sps:$4 sm:$0xff]  }
 0x1e1   : > { %4100 = vmatpush1.bf16.msra.mxu0 %v6179_v20  ;;  %v541_v20 = vrot.slane %v461_v3, %v7272_v7  ;;  %v6310_v3 = vld [vmem:[%s7189_s24 + $0x8ec] ss:$16 sps:$4 sm:$0xff]  }
 0x1e2   : > { %4428 = vmatpush1.bf16.msra.mxu1 %v6182_v18  ;;  %4101 = vmatprep.subr.bf16.mxu0 %v6187_v22  ;;  %v6256_v18 = vld [vmem:[%s7189_s24 + $0x7cc] ss:$16 sps:$4 sm:$0xff]   ;;  %v739_v22 = vmul.f32 %v705_v6, %v7334_v49  ;;  %v6308_v6 = vld [vmem:[%s7189_s24 + $0x8e8] ss:$16 sps:$4 sm:$0xff]  }
 0x1e3   : > { %4429 = vmatprep.subr.bf16.mxu1 %v6190_v24  ;;  %v6254_v24 = vld [vmem:[%s7189_s24 + $0x7c8] ss:$16 sps:$4 sm:$0xff]  }
 0x1e5   : > { %4102 = vmatpush1.bf16.msra.mxu0 %v6185_v23  ;;  %v6251_v23 = vld [vmem:[%s7189_s24 + $0x7c0] ss:$16 sps:$4 sm:$0xff]  }
 0x1e6   : > { %4430 = vmatpush1.bf16.msra.mxu1 %v6188_v26  ;;  %4103 = vmatprep.subr.bf16.mxu0 %v6193_v17  ;;  %v6259_v26 = vld [vmem:[%s7189_s24 + $0x7e4] ss:$16 sps:$4 sm:$0xff]   ;;  %v575_v17 = vmul.f32 %v541_v20, %v7308_v30  ;;  %v6314_v20 = vld [vmem:[%s7189_s24 + $0x908] ss:$16 sps:$4 sm:$0xff]  }
 0x1e7   : > { %4431 = vmatprep.subr.bf16.mxu1 %v6196_v28 }
 0x1e8   : > { %v755_v28 = vadd.f32 %v739_v22, %v575_v17  ;;  %v6322_v22 = vld [vmem:[%s7189_s24 + $0x92c] ss:$16 sps:$4 sm:$0xff]  }
 0x1e9   : > { %4104 = vmatpush1.bf16.msra.mxu0 %v6191_v27  ;;  %v6262_v27 = vld [vmem:[%s7189_s24 + $0x7ec] ss:$16 sps:$4 sm:$0xff]  }
 0x1ea   : > { %4432 = vmatpush1.bf16.msra.mxu1 %v6194_v31  ;;  %4105 = vmatprep.subr.bf16.mxu0 %v6199_v32  ;;  %v7615_v31 = vld [vmem:[#allocation4 + $0x8] sm:$0xff] }
 0x1eb   : > { %4433 = vmatprep.subr.bf16.mxu1 %v6202_v34  ;;  %v805_v32 = vrot.slane %v7615_v31, %v7276_v10  ;;  %v6260_v34 = vld [vmem:[%s7189_s24 + $0x7e8] ss:$16 sps:$4 sm:$0xff]   ;;  %v6328_v17 = vld [vmem:[%s7189_s24 + $0x94c] ss:$16 sps:$4 sm:$0xff]  }
 0x1ed   : > { %4106 = vmatpush1.bf16.msra.mxu0 %v6197_v33  ;;  %v6257_v33 = vld [vmem:[%s7189_s24 + $0x7e0] ss:$16 sps:$4 sm:$0xff]  }
 0x1ee   : > { %4434 = vmatpush1.bf16.msra.mxu1 %v6200_v35  ;;  %4107 = vmatprep.subr.bf16.mxu0 %v6205_v36  ;;  %v6265_v35 = vld [vmem:[%s7189_s24 + $0x804] ss:$16 sps:$4 sm:$0xff]   ;;  %v6268_v36 = vld [vmem:[%s7189_s24 + $0x80c] ss:$16 sps:$4 sm:$0xff]  }
 0x1ef   : > { %4435 = vmatprep.subr.bf16.mxu1 %v6208_v38  ;;  %v6263_v38 = vld [vmem:[%s7189_s24 + $0x800] ss:$16 sps:$4 sm:$0xff]  }
 0x1f1   : > { %4108 = vmatpush1.bf16.msra.mxu0 %v6203_v37  ;;  %v855_v37 = vadd.f32 %v805_v32, %v755_v28  ;;  %v6326_v28 = vld [vmem:[%s7189_s24 + $0x948] ss:$16 sps:$4 sm:$0xff]   ;;  %v6331_v32 = vld [vmem:[%s7189_s24 + $0x964] ss:$16 sps:$4 sm:$0xff]  }
 0x1f2   : > { %4436 = vmatpush1.bf16.msra.mxu1 %v6206_v39  ;;  %4109 = vmatprep.subr.bf16.mxu0 %v6211_v40  ;;  %v868_v39 = vpack.c.bf16 %v7354_v21, %v7354_v21  ;;  %v6266_v40 = vld [vmem:[%s7189_s24 + $0x808] ss:$16 sps:$4 sm:$0xff]   ;;  %v6277_v21 = vld [vmem:[%s7189_s24 + $0x844] ss:$16 sps:$4 sm:$0xff]  }
 0x1f3   : > { %4437 = vmatprep.subr.bf16.mxu1 %v6214_v42  ;;  %v871_v42 = vpack.c.bf16 %v855_v37, %v855_v37  ;;  %v621_v37 = vrot.slane %v7594_v0, %v7276_v10 }
 0x1f5   : > { %4110 = vmatpush1.bf16.msra.mxu0 %v6209_v41  ;;  %v6271_v41 = vld [vmem:[%s7189_s24 + $0x824] ss:$16 sps:$4 sm:$0xff]  }
 0x1f6   : > { %4438 = vmatpush1.bf16.msra.mxu1 %v6212_v43  ;;  %4111 = vmatprep.subr.bf16.mxu0 %v6217_v44  ;;  %v6274_v43 = vld [vmem:[%s7189_s24 + $0x82c] ss:$16 sps:$4 sm:$0xff]   ;;  %v6269_v44 = vld [vmem:[%s7189_s24 + $0x820] ss:$16 sps:$4 sm:$0xff]  }
 0x1f7   : > { %4439 = vmatprep.subr.bf16.mxu1 %v6220_v46  ;;  %v6280_v46 = vld [vmem:[%s7189_s24 + $0x84c] ss:$16 sps:$4 sm:$0xff]  }
 0x1f9   : > { %4112 = vmatpush1.bf16.msra.mxu0 %v6215_v45  ;;  %v6272_v45 = vld [vmem:[%s7189_s24 + $0x828] ss:$16 sps:$4 sm:$0xff]  }
 0x1fa   : > { %4440 = vmatpush1.bf16.msra.mxu1 %v6218_v47  ;;  %4113 = vmatprep.subr.bf16.mxu0 %v6223_v48  ;;  %v6275_v47 = vld [vmem:[%s7189_s24 + $0x840] ss:$16 sps:$4 sm:$0xff]   ;;  %v6278_v48 = vld [vmem:[%s7189_s24 + $0x848] ss:$16 sps:$4 sm:$0xff]  }
 0x1fb   : > { %4441 = vmatprep.subr.bf16.mxu1 %v6226_v51  ;;  %v6286_v51 = vld [vmem:[%s7189_s24 + $0x86c] ss:$16 sps:$4 sm:$0xff]  }
 0x1fd   : > { %4114 = vmatpush1.bf16.msra.mxu0 %v6221_v50  ;;  %v6283_v50 = vld [vmem:[%s7189_s24 + $0x864] ss:$16 sps:$4 sm:$0xff]  }
 0x1fe   : > { %4442 = vmatpush1.bf16.msra.mxu1 %v6224_v52  ;;  %4115 = vmatprep.subr.bf16.mxu0 %v6229_v54  ;;  %v6281_v52 = vld [vmem:[%s7189_s24 + $0x860] ss:$16 sps:$4 sm:$0xff]   ;;  %v6284_v54 = vld [vmem:[%s7189_s24 + $0x868] ss:$16 sps:$4 sm:$0xff]  }
 0x1ff   : > { %4443 = vmatprep.subr.bf16.mxu1 %v6232_v55  ;;  %v6292_v55 = vld [vmem:[%s7189_s24 + $0x88c] ss:$16 sps:$4 sm:$0xff]  }
 0x201   : > { %4116 = vmatpush1.bf16.msra.mxu0 %v6227_v16  ;;  %v6289_v16 = vld [vmem:[%s7189_s24 + $0x884] ss:$16 sps:$4 sm:$0xff]  }
 0x202   : > { %4444 = vmatpush1.bf16.msra.mxu1 %v6230_v56  ;;  %4117 = vmatprep.subr.bf16.mxu0 %v6235_v57  ;;  %v6287_v56 = vld [vmem:[%s7189_s24 + $0x880] ss:$16 sps:$4 sm:$0xff]   ;;  %v6290_v57 = vld [vmem:[%s7189_s24 + $0x888] ss:$16 sps:$4 sm:$0xff]  }
 0x203   : > { %4445 = vmatprep.subr.bf16.mxu1 %v6238_v59  ;;  %v6298_v59 = vld [vmem:[%s7189_s24 + $0x8ac] ss:$16 sps:$4 sm:$0xff]  }
 0x205   : > { %4118 = vmatpush1.bf16.msra.mxu0 %v6233_v58  ;;  %v6295_v58 = vld [vmem:[%s7189_s24 + $0x8a4] ss:$16 sps:$4 sm:$0xff]  }
 0x206   : > { %4446 = vmatpush1.bf16.msra.mxu1 %v6236_v60  ;;  %4119 = vmatprep.subr.bf16.mxu0 %v6241_v61  ;;  %v6293_v60 = vld [vmem:[%s7189_s24 + $0x8a0] ss:$16 sps:$4 sm:$0xff]   ;;  %v6296_v61 = vld [vmem:[%s7189_s24 + $0x8a8] ss:$16 sps:$4 sm:$0xff]  }
 0x207   : > { %4447 = vmatprep.subr.bf16.mxu1 %v6244_v63  ;;  %v6304_v63 = vld [vmem:[%s7189_s24 + $0x8cc] ss:$16 sps:$4 sm:$0xff]  }
 0x209   : > { %4120 = vmatpush1.bf16.msra.mxu0 %v6239_v62  ;;  %v6301_v62 = vld [vmem:[%s7189_s24 + $0x8c4] ss:$16 sps:$4 sm:$0xff]  }
 0x20a   : > { %4448 = vmatpush1.bf16.msra.mxu1 %v6242_v2  ;;  %4121 = vmatprep.subr.bf16.mxu0 %v6247_v14  ;;  %v6302_v2 = vld [vmem:[%s7189_s24 + $0x8c8] ss:$16 sps:$4 sm:$0xff]   ;;  %v6307_v14 = vld [vmem:[%s7189_s24 + $0x8e4] ss:$16 sps:$4 sm:$0xff]  }
 0x20b   : > { %4449 = vmatprep.subr.bf16.mxu1 %v6250_v5  ;;  %v6305_v5 = vld [vmem:[%s7189_s24 + $0x8e0] ss:$16 sps:$4 sm:$0xff]  }
 0x20d   : > { %4122 = vmatpush1.bf16.msra.mxu0 %v6245_v8  ;;  %v6313_v8 = vld [vmem:[%s7189_s24 + $0x904] ss:$16 sps:$4 sm:$0xff]  }
 0x20e   : > { %4450 = vmatpush1.bf16.msra.mxu1 %v6248_v11  ;;  %4123 = vmatprep.subr.bf16.mxu0 %v6253_v53  ;;  %v6316_v11 = vld [vmem:[%s7189_s24 + $0x90c] ss:$16 sps:$4 sm:$0xff]   ;;  %v6311_v53 = vld [vmem:[%s7189_s24 + $0x900] ss:$16 sps:$4 sm:$0xff]  }
 0x20f   : > { %4451 = vmatprep.subr.bf16.mxu1 %v6256_v18  ;;  %v6319_v18 = vld [vmem:[%s7189_s24 + $0x924] ss:$16 sps:$4 sm:$0xff]  }
 0x211   : > { %4124 = vmatpush1.bf16.msra.mxu0 %v6251_v23  ;;  %v6317_v23 = vld [vmem:[%s7189_s24 + $0x920] ss:$16 sps:$4 sm:$0xff]  }
 0x212   : > { %4452 = vmatpush1.bf16.msra.mxu1 %v6254_v24  ;;  %4125 = vmatprep.subr.bf16.mxu0 %v6259_v26  ;;  %v6320_v24 = vld [vmem:[%s7189_s24 + $0x928] ss:$16 sps:$4 sm:$0xff]   ;;  %v6325_v26 = vld [vmem:[%s7189_s24 + $0x944] ss:$16 sps:$4 sm:$0xff]  }
 0x213   : > { %4453 = vmatprep.subr.bf16.mxu1 %v6262_v27  ;;  %v6323_v27 = vld [vmem:[%s7189_s24 + $0x940] ss:$16 sps:$4 sm:$0xff]  }
 0x215   : > { %4126 = vmatpush1.bf16.msra.mxu0 %v6257_v33  ;;  %v6334_v33 = vld [vmem:[%s7189_s24 + $0x96c] ss:$16 sps:$4 sm:$0xff]  }
 0x216   : > { %4454 = vmatpush1.bf16.msra.mxu1 %v6260_v34  ;;  %4136 = vmatprep.subr.bf16.mxu0 %v6265_v35  ;;  %v6329_v34 = vld [vmem:[%s7189_s24 + $0x960] ss:$16 sps:$4 sm:$0xff]   ;;  %v6332_v35 = vld [vmem:[%s7189_s24 + $0x968] ss:$16 sps:$4 sm:$0xff]  }
 0x217   : > { %4464 = vmatprep.subr.bf16.mxu1 %v6268_v36  ;;  %v6337_v36 = vld [vmem:[%s7189_s24 + $0x984] ss:$16 sps:$4 sm:$0xff]  }
 0x218   : > { %4128 = vmatmul.mubr.bf16.vlgmr.msra.gmra.mrb[0].mxu0 %v868_v39 }
 0x219   : > { %4456 = vmatmul.mubr.bf16.vlgmr.msra.gmra.mrb[0].mxu1 %v868_v39  ;;  %4137 = vmatpush1.bf16.msra.mxu0 %v6263_v38  ;;  %v6340_v38 = vld [vmem:[%s7189_s24 + $0x98c] ss:$16 sps:$4 sm:$0xff]   ;;  %v457_v39 = vrot.slane %v7594_v0, %v7272_v7  ;;  %v6344_v0 = vld [vmem:[%s7189_s24 + $0x9a8] ss:$16 sps:$4 sm:$0xff]  }
 0x21a   : > { %4168 = vmatprep.mubr.bf16.mxu0 %v871_v42  ;;  %4465 = vmatpush1.bf16.msra.mxu1 %v6266_v40  ;;  %v6335_v40 = vld [vmem:[%s7189_s24 + $0x980] ss:$16 sps:$4 sm:$0xff]  }
 0x21b   : > { %4496 = vmatprep.mubr.bf16.mxu1 %v871_v42  ;;  %4138 = vmatprep.subr.bf16.mxu0 %v6271_v41  ;;  %v6338_v41 = vld [vmem:[%s7189_s24 + $0x988] ss:$16 sps:$4 sm:$0xff]   ;;  %v6343_v42 = vld [vmem:[%s7189_s24 + $0x9a4] ss:$16 sps:$4 sm:$0xff]  }
 0x21c   : > { %4466 = vmatprep.subr.bf16.mxu1 %v6274_v43  ;;  %v701_v43 = vrot.slane %v621_v37, %v7276_v10  ;;  %v6395_v37 = vld [vmem:[%s7189_s24 + $0xac0] ss:$16 sps:$4 sm:$0xff]  }
 0x21d   : > { %4139 = vmatpush1.bf16.msra.mxu0 %v6269_v44  ;;  %v6346_v44 = vld [vmem:[%s7189_s24 + $0x9ac] ss:$16 sps:$4 sm:$0xff]  }
 0x21e   : > { %4467 = vmatpush1.bf16.msra.mxu1 %v6272_v45  ;;  %4140 = vmatprep.subr.bf16.mxu0 %v6277_v21  ;;  %v537_v45 = vrot.slane %v457_v39, %v7272_v7  ;;  %v6341_v21 = vld [vmem:[%s7189_s24 + $0x9a0] ss:$16 sps:$4 sm:$0xff]   ;;  %v6403_v39 = vld [vmem:[%s7189_s24 + $0xae4] ss:$16 sps:$4 sm:$0xff]  }
 0x21f   : > { %4468 = vmatprep.subr.bf16.mxu1 %v6280_v46  ;;  %v6349_v46 = vld [vmem:[%s7189_s24 + $0x9c4] ss:$16 sps:$4 sm:$0xff]  }
 0x221   : > { %4141 = vmatpush1.bf16.msra.mxu0 %v6275_v47  ;;  %v738_v47 = vmul.f32 %v701_v43, %v7334_v49  ;;  %v6409_v43 = vld [vmem:[%s7189_s24 + $0xb04] ss:$16 sps:$4 sm:$0xff]  }
 0x222   : > { %4469 = vmatpush1.bf16.msra.mxu1 %v6278_v48  ;;  %4142 = vmatprep.subr.bf16.mxu0 %v6283_v50  ;;  %v6352_v48 = vld [vmem:[%s7189_s24 + $0x9cc] ss:$16 sps:$4 sm:$0xff]   ;;  %v574_v50 = vmul.f32 %v537_v45, %v7308_v30  ;;  %v6407_v45 = vld [vmem:[%s7189_s24 + $0xb00] ss:$16 sps:$4 sm:$0xff]  }
 0x223   : > { %4470 = vmatprep.subr.bf16.mxu1 %v6286_v51  ;;  %v6347_v51 = vld [vmem:[%s7189_s24 + $0x9c0] ss:$16 sps:$4 sm:$0xff]  }
 0x225   : > { %4143 = vmatpush1.bf16.msra.mxu0 %v6281_v52  ;;  %v6350_v52 = vld [vmem:[%s7189_s24 + $0x9c8] ss:$16 sps:$4 sm:$0xff]  }
 0x226   : > { %4471 = vmatpush1.bf16.msra.mxu1 %v6284_v54  ;;  %4144 = vmatprep.subr.bf16.mxu0 %v6289_v16  ;;  %v6355_v54 = vld [vmem:[%s7189_s24 + $0x9e4] ss:$16 sps:$4 sm:$0xff]   ;;  %v754_v16 = vadd.f32 %v738_v47, %v574_v50  ;;  %v6413_v47 = vld [vmem:[%s7189_s24 + $0xb20] ss:$16 sps:$4 sm:$0xff]  }
 0x227   : > { %4472 = vmatprep.subr.bf16.mxu1 %v6292_v55  ;;  %v801_v55 = vrot.slane %v7615_v31, %v7272_v7  ;;  %v6421_v50 = vld [vmem:[%s7189_s24 + $0xb44] ss:$16 sps:$4 sm:$0xff]  }
 0x229   : > { %4145 = vmatpush1.bf16.msra.mxu0 %v6287_v56  ;;  %v6358_v56 = vld [vmem:[%s7189_s24 + $0x9ec] ss:$16 sps:$4 sm:$0xff]  }
 0x22a   : > { %4473 = vmatpush1.bf16.msra.mxu1 %v6290_v57  ;;  %4146 = vmatprep.subr.bf16.mxu0 %v6295_v58  ;;  %v6353_v57 = vld [vmem:[%s7189_s24 + $0x9e0] ss:$16 sps:$4 sm:$0xff]   ;;  %v6356_v58 = vld [vmem:[%s7189_s24 + $0x9e8] ss:$16 sps:$4 sm:$0xff]  }
 0x22b   : > { %4474 = vmatprep.subr.bf16.mxu1 %v6298_v59  ;;  %v854_v59 = vadd.f32 %v801_v55, %v754_v16  ;;  %v6427_v16 = vld [vmem:[%s7189_s24 + $0xb64] ss:$16 sps:$4 sm:$0xff]   ;;  %v6430_v55 = vld [vmem:[%s7189_s24 + $0xb6c] ss:$16 sps:$4 sm:$0xff]  }
 0x22d   : > { %4147 = vmatpush1.bf16.msra.mxu0 %v6293_v60  ;;  %v6361_v60 = vld [vmem:[%s7189_s24 + $0xa04] ss:$16 sps:$4 sm:$0xff]  }
 0x22e   : > { %4475 = vmatpush1.bf16.msra.mxu1 %v6296_v61  ;;  %4148 = vmatprep.subr.bf16.mxu0 %v6301_v62  ;;  %v6364_v61 = vld [vmem:[%s7189_s24 + $0xa0c] ss:$16 sps:$4 sm:$0xff]   ;;  %v6359_v62 = vld [vmem:[%s7189_s24 + $0xa00] ss:$16 sps:$4 sm:$0xff]  }
 0x22f   : > { %4476 = vmatprep.subr.bf16.mxu1 %v6304_v63  ;;  %v870_v63 = vpack.c.bf16 %v854_v59, %v854_v59  ;;  %v6436_v59 = vld [vmem:[%s7189_s24 + $0xb8c] ss:$16 sps:$4 sm:$0xff]  }
 0x231   : > { %4149 = vmatpush1.bf16.msra.mxu0 %v6299_v1  ;;  %v6362_v1 = vld [vmem:[%s7189_s24 + $0xa08] ss:$16 sps:$4 sm:$0xff]  }
 0x232   : > { %4477 = vmatpush1.bf16.msra.mxu1 %v6302_v2  ;;  %4150 = vmatprep.subr.bf16.mxu0 %v6307_v14  ;;  %v6367_v2 = vld [vmem:[%s7189_s24 + $0xa24] ss:$16 sps:$4 sm:$0xff]   ;;  %v873_v14 = vpack.c.bf16 %v7406_v25, %v7406_v25  ;;  %v6371_v25 = vld [vmem:[%s7189_s24 + $0xa40] ss:$16 sps:$4 sm:$0xff]  }
 0x233   : > { %4478 = vmatprep.subr.bf16.mxu1 %v6310_v3  ;;  %v6370_v3 = vld [vmem:[%s7189_s24 + $0xa2c] ss:$16 sps:$4 sm:$0xff]  }
 0x235   : > { %4151 = vmatpush1.bf16.msra.mxu0 %v6305_v5  ;;  %v6365_v5 = vld [vmem:[%s7189_s24 + $0xa20] ss:$16 sps:$4 sm:$0xff]  }
 0x236   : > { %4479 = vmatpush1.bf16.msra.mxu1 %v6308_v6  ;;  %4152 = vmatprep.subr.bf16.mxu0 %v6313_v8  ;;  %v6368_v6 = vld [vmem:[%s7189_s24 + $0xa28] ss:$16 sps:$4 sm:$0xff]   ;;  %v6373_v8 = vld [vmem:[%s7189_s24 + $0xa44] ss:$16 sps:$4 sm:$0xff]  }
 0x237   : > { %4480 = vmatprep.subr.bf16.mxu1 %v6316_v11  ;;  %v6376_v11 = vld [vmem:[%s7189_s24 + $0xa4c] ss:$16 sps:$4 sm:$0xff]  }
 0x239   : > { %4153 = vmatpush1.bf16.msra.mxu0 %v6311_v53  ;;  %v6374_v53 = vld [vmem:[%s7189_s24 + $0xa48] ss:$16 sps:$4 sm:$0xff]  }
 0x23a   : > { %4481 = vmatpush1.bf16.msra.mxu1 %v6314_v20  ;;  %4154 = vmatprep.subr.bf16.mxu0 %v6319_v18  ;;  %v6379_v20 = vld [vmem:[%s7189_s24 + $0xa64] ss:$16 sps:$4 sm:$0xff]   ;;  %v6382_v18 = vld [vmem:[%s7189_s24 + $0xa6c] ss:$16 sps:$4 sm:$0xff]  }
 0x23b   : > { %4482 = vmatprep.subr.bf16.mxu1 %v6322_v22  ;;  %v6377_v22 = vld [vmem:[%s7189_s24 + $0xa60] ss:$16 sps:$4 sm:$0xff]  }
 0x23d   : > { %4155 = vmatpush1.bf16.msra.mxu0 %v6317_v23  ;;  %v6380_v23 = vld [vmem:[%s7189_s24 + $0xa68] ss:$16 sps:$4 sm:$0xff]  }
 0x23e   : > { %4483 = vmatpush1.bf16.msra.mxu1 %v6320_v24  ;;  %4156 = vmatprep.subr.bf16.mxu0 %v6325_v26  ;;  %v6385_v24 = vld [vmem:[%s7189_s24 + $0xa84] ss:$16 sps:$4 sm:$0xff]   ;;  %v6388_v26 = vld [vmem:[%s7189_s24 + $0xa8c] ss:$16 sps:$4 sm:$0xff]  }
 0x23f   : > { %4484 = vmatprep.subr.bf16.mxu1 %v6328_v17  ;;  %v6383_v17 = vld [vmem:[%s7189_s24 + $0xa80] ss:$16 sps:$4 sm:$0xff]  }
 0x241   : > { %4157 = vmatpush1.bf16.msra.mxu0 %v6323_v27  ;;  %v6386_v27 = vld [vmem:[%s7189_s24 + $0xa88] ss:$16 sps:$4 sm:$0xff]  }
 0x242   : > { %4485 = vmatpush1.bf16.msra.mxu1 %v6326_v28  ;;  %4158 = vmatprep.subr.bf16.mxu0 %v6331_v32  ;;  %v6391_v28 = vld [vmem:[%s7189_s24 + $0xaa4] ss:$16 sps:$4 sm:$0xff]   ;;  %v6394_v32 = vld [vmem:[%s7189_s24 + $0xaac] ss:$16 sps:$4 sm:$0xff]  }
 0x243   : > { %4486 = vmatprep.subr.bf16.mxu1 %v6334_v33  ;;  %v6389_v33 = vld [vmem:[%s7189_s24 + $0xaa0] ss:$16 sps:$4 sm:$0xff]  }
 0x245   : > { %4159 = vmatpush1.bf16.msra.mxu0 %v6329_v34  ;;  %v6392_v34 = vld [vmem:[%s7189_s24 + $0xaa8] ss:$16 sps:$4 sm:$0xff]  }
 0x246   : > { %4487 = vmatpush1.bf16.msra.mxu1 %v6332_v35  ;;  %4160 = vmatprep.subr.bf16.mxu0 %v6337_v36  ;;  %v6397_v35 = vld [vmem:[%s7189_s24 + $0xac4] ss:$16 sps:$4 sm:$0xff]   ;;  %v6400_v36 = vld [vmem:[%s7189_s24 + $0xacc] ss:$16 sps:$4 sm:$0xff]  }
 0x247   : > { %4488 = vmatprep.subr.bf16.mxu1 %v6340_v38  ;;  %v6398_v38 = vld [vmem:[%s7189_s24 + $0xac8] ss:$16 sps:$4 sm:$0xff]  }
 0x249   : > { %4161 = vmatpush1.bf16.msra.mxu0 %v6335_v40  ;;  %v6406_v40 = vld [vmem:[%s7189_s24 + $0xaec] ss:$16 sps:$4 sm:$0xff]  }
 0x24a   : > { %4489 = vmatpush1.bf16.msra.mxu1 %v6338_v41  ;;  %4162 = vmatprep.subr.bf16.mxu0 %v6343_v42  ;;  %v6401_v41 = vld [vmem:[%s7189_s24 + $0xae0] ss:$16 sps:$4 sm:$0xff]   ;;  %v6404_v42 = vld [vmem:[%s7189_s24 + $0xae8] ss:$16 sps:$4 sm:$0xff]  }
 0x24b   : > { %4490 = vmatprep.subr.bf16.mxu1 %v6346_v44  ;;  %v6412_v44 = vld [vmem:[%s7189_s24 + $0xb0c] ss:$16 sps:$4 sm:$0xff]  }
 0x24d   : > { %4163 = vmatpush1.bf16.msra.mxu0 %v6341_v21  ;;  %v6410_v21 = vld [vmem:[%s7189_s24 + $0xb08] ss:$16 sps:$4 sm:$0xff]  }
 0x24e   : > { %4491 = vmatpush1.bf16.msra.mxu1 %v6344_v0  ;;  %4164 = vmatprep.subr.bf16.mxu0 %v6349_v46  ;;  %v6415_v0 = vld [vmem:[%s7189_s24 + $0xb24] ss:$16 sps:$4 sm:$0xff]   ;;  %v6418_v46 = vld [vmem:[%s7189_s24 + $0xb2c] ss:$16 sps:$4 sm:$0xff]  }
 0x24f   : > { %4492 = vmatprep.subr.bf16.mxu1 %v6352_v48  ;;  %v6416_v48 = vld [vmem:[%s7189_s24 + $0xb28] ss:$16 sps:$4 sm:$0xff]  }
 0x251   : > { %4165 = vmatpush1.bf16.msra.mxu0 %v6347_v51  ;;  %v6424_v51 = vld [vmem:[%s7189_s24 + $0xb4c] ss:$16 sps:$4 sm:$0xff]  }
 0x252   : > { %4493 = vmatpush1.bf16.msra.mxu1 %v6350_v52  ;;  %4166 = vmatprep.subr.bf16.mxu0 %v6355_v54  ;;  %v6419_v52 = vld [vmem:[%s7189_s24 + $0xb40] ss:$16 sps:$4 sm:$0xff]   ;;  %v6422_v54 = vld [vmem:[%s7189_s24 + $0xb48] ss:$16 sps:$4 sm:$0xff]  }
 0x253   : > { %4494 = vmatprep.subr.bf16.mxu1 %v6358_v56  ;;  %v6425_v56 = vld [vmem:[%s7189_s24 + $0xb60] ss:$16 sps:$4 sm:$0xff]  }
 0x255   : > { %4167 = vmatpush1.bf16.msra.mxu0 %v6353_v57  ;;  %v6428_v57 = vld [vmem:[%s7189_s24 + $0xb68] ss:$16 sps:$4 sm:$0xff]  }
 0x256   : > { %4495 = vmatpush1.bf16.msra.mxu1 %v6356_v58  ;;  %4177 = vmatprep.subr.bf16.mxu0 %v6361_v60  ;;  %v6433_v58 = vld [vmem:[%s7189_s24 + $0xb84] ss:$16 sps:$4 sm:$0xff]   ;;  %v7749_v60 = vld [vmem:[#allocation2 + $0x18] sm:$0xff] }
 0x257   : > { %4505 = vmatprep.subr.bf16.mxu1 %v6364_v61  ;;  %v641_v61 = vrot.slane %v7749_v60, %v7282_v13 }
 0x258   : > { %4169 = vmatmul.mubr.bf16.vlgmr.msra.gmra.mrb[0].mxu0 %v870_v63 }
 0x259   : > { %4497 = vmatmul.mubr.bf16.vlgmr.msra.gmra.mrb[0].mxu1 %v870_v63  ;;  %4178 = vmatpush1.bf16.msra.mxu0 %v6359_v62  ;;  %v6431_v62 = vld [vmem:[%s7189_s24 + $0xb80] ss:$16 sps:$4 sm:$0xff]   ;;  %v6434_v63 = vld [vmem:[%s7189_s24 + $0xb88] ss:$16 sps:$4 sm:$0xff]  }
 0x25a   : > { %4209 = vmatprep.mubr.bf16.mxu0 %v873_v14  ;;  %4506 = vmatpush1.bf16.msra.mxu1 %v6362_v1  ;;  %v6439_v1 = vld [vmem:[%s7189_s24 + $0xba4] ss:$16 sps:$4 sm:$0xff]  }
 0x25b   : > { %4537 = vmatprep.mubr.bf16.mxu1 %v873_v14  ;;  %4179 = vmatprep.subr.bf16.mxu0 %v6367_v2  ;;  %v477_v2 = vrot.slane %v7749_v60, %v7274_v9  ;;  %v6442_v14 = vld [vmem:[%s7189_s24 + $0xbac] ss:$16 sps:$4 sm:$0xff]  }
 0x25c   : > { %4507 = vmatprep.subr.bf16.mxu1 %v6370_v3  ;;  %v721_v3 = vrot.slane %v641_v61, %v7276_v10  ;;  %v6499_v61 = vld [vmem:[%s7189_s24 + $0xce4] ss:$16 sps:$4 sm:$0xff]  }
 0x25d   : > { %4180 = vmatpush1.bf16.msra.mxu0 %v6365_v5  ;;  %v6437_v5 = vld [vmem:[%s7189_s24 + $0xba0] ss:$16 sps:$4 sm:$0xff]  }
 0x25e   : > { %4508 = vmatpush1.bf16.msra.mxu1 %v6368_v6  ;;  %4181 = vmatprep.subr.bf16.mxu0 %v6373_v8  ;;  %v6440_v6 = vld [vmem:[%s7189_s24 + $0xba8] ss:$16 sps:$4 sm:$0xff]   ;;  %v6445_v8 = vld [vmem:[%s7189_s24 + $0xbc4] ss:$16 sps:$4 sm:$0xff]  }
 0x25f   : > { %4509 = vmatprep.subr.bf16.mxu1 %v6376_v11  ;;  %v557_v11 = vrot.slane %v477_v2, %v7272_v7  ;;  %v6505_v2 = vld [vmem:[%s7189_s24 + $0xd04] ss:$16 sps:$4 sm:$0xff]  }
 0x261   : > { %4182 = vmatpush1.bf16.msra.mxu0 %v6371_v25  ;;  %v6448_v25 = vld [vmem:[%s7189_s24 + $0xbcc] ss:$16 sps:$4 sm:$0xff]  }
 0x262   : > { %4510 = vmatpush1.bf16.msra.mxu1 %v6374_v53  ;;  %4183 = vmatprep.subr.bf16.mxu0 %v6379_v20  ;;  %v743_v53 = vmul.f32 %v721_v3, %v7334_v49  ;;  %v6443_v20 = vld [vmem:[%s7189_s24 + $0xbc0] ss:$16 sps:$4 sm:$0xff]  }
 0x263   : > { %4511 = vmatprep.subr.bf16.mxu1 %v6382_v18  ;;  %v6446_v18 = vld [vmem:[%s7189_s24 + $0xbc8] ss:$16 sps:$4 sm:$0xff]   ;;  %v6503_v3 = vld [vmem:[%s7189_s24 + $0xd00] ss:$16 sps:$4 sm:$0xff]  }
 0x265   : > { %4184 = vmatpush1.bf16.msra.mxu0 %v6377_v22  ;;  %v6451_v22 = vld [vmem:[%s7189_s24 + $0xbe4] ss:$16 sps:$4 sm:$0xff]  }
 0x266   : > { %4512 = vmatpush1.bf16.msra.mxu1 %v6380_v23  ;;  %4185 = vmatprep.subr.bf16.mxu0 %v6385_v24  ;;  %v579_v23 = vmul.f32 %v557_v11, %v7308_v30  ;;  %v6454_v24 = vld [vmem:[%s7189_s24 + $0xbec] ss:$16 sps:$4 sm:$0xff]   ;;  %v6509_v11 = vld [vmem:[%s7189_s24 + $0xd20] ss:$16 sps:$4 sm:$0xff]  }
 0x267   : > { %4513 = vmatprep.subr.bf16.mxu1 %v6388_v26 }
 0x268   : > { %v759_v26 = vadd.f32 %v743_v53, %v579_v23  ;;  %v6517_v53 = vld [vmem:[%s7189_s24 + $0xd44] ss:$16 sps:$4 sm:$0xff]  }
 0x269   : > { %4186 = vmatpush1.bf16.msra.mxu0 %v6383_v17  ;;  %v821_v17 = vrot.slane %v7615_v31, %v7286_v15  ;;  %v872_v15 = vpack.c.bf16 %v7410_v29, %v7410_v29  ;;  %v6469_v29 = vld [vmem:[%s7189_s24 + $0xc44] ss:$16 sps:$4 sm:$0xff]  }
 0x26a   : > { %4514 = vmatpush1.bf16.msra.mxu1 %v6386_v27  ;;  %4187 = vmatprep.subr.bf16.mxu0 %v6391_v28  ;;  %v6449_v27 = vld [vmem:[%s7189_s24 + $0xbe0] ss:$16 sps:$4 sm:$0xff]   ;;  %v6452_v28 = vld [vmem:[%s7189_s24 + $0xbe8] ss:$16 sps:$4 sm:$0xff]   ;;  %v6523_v23 = vld [vmem:[%s7189_s24 + $0xd64] ss:$16 sps:$4 sm:$0xff]  }
 0x26b   : > { %4515 = vmatprep.subr.bf16.mxu1 %v6394_v32  ;;  %v6457_v32 = vld [vmem:[%s7189_s24 + $0xc04] ss:$16 sps:$4 sm:$0xff]  }
 0x26d   : > { %4188 = vmatpush1.bf16.msra.mxu0 %v6389_v33  ;;  %v6460_v33 = vld [vmem:[%s7189_s24 + $0xc0c] ss:$16 sps:$4 sm:$0xff]  }
 0x26e   : > { %4516 = vmatpush1.bf16.msra.mxu1 %v6392_v34  ;;  %4189 = vmatprep.subr.bf16.mxu0 %v6397_v35  ;;  %v859_v34 = vadd.f32 %v821_v17, %v759_v26  ;;  %v6455_v35 = vld [vmem:[%s7189_s24 + $0xc00] ss:$16 sps:$4 sm:$0xff]   ;;  %v6524_v17 = vld [vmem:[%s7189_s24 + $0xd68] ss:$16 sps:$4 sm:$0xff]  }
 0x26f   : > { %4517 = vmatprep.subr.bf16.mxu1 %v6400_v36  ;;  %v6458_v36 = vld [vmem:[%s7189_s24 + $0xc08] ss:$16 sps:$4 sm:$0xff]   ;;  %v6521_v26 = vld [vmem:[%s7189_s24 + $0xd60] ss:$16 sps:$4 sm:$0xff]  }
 0x271   : > { %4190 = vmatpush1.bf16.msra.mxu0 %v6395_v37  ;;  %v6463_v37 = vld [vmem:[%s7189_s24 + $0xc24] ss:$16 sps:$4 sm:$0xff]  }
 0x272   : > { %4518 = vmatpush1.bf16.msra.mxu1 %v6398_v38  ;;  %4191 = vmatprep.subr.bf16.mxu0 %v6403_v39  ;;  %v875_v38 = vpack.c.bf16 %v859_v34, %v859_v34  ;;  %v6466_v39 = vld [vmem:[%s7189_s24 + $0xc2c] ss:$16 sps:$4 sm:$0xff]   ;;  %v6527_v34 = vld [vmem:[%s7189_s24 + $0xd80] ss:$16 sps:$4 sm:$0xff]  }
 0x273   : > { %4519 = vmatprep.subr.bf16.mxu1 %v6406_v40  ;;  %v6461_v40 = vld [vmem:[%s7189_s24 + $0xc20] ss:$16 sps:$4 sm:$0xff]  }
 0x275   : > { %4192 = vmatpush1.bf16.msra.mxu0 %v6401_v41  ;;  %v6464_v41 = vld [vmem:[%s7189_s24 + $0xc28] ss:$16 sps:$4 sm:$0xff]  }
 0x276   : > { %4520 = vmatpush1.bf16.msra.mxu1 %v6404_v42  ;;  %4193 = vmatprep.subr.bf16.mxu0 %v6409_v43  ;;  %v6472_v42 = vld [vmem:[%s7189_s24 + $0xc4c] ss:$16 sps:$4 sm:$0xff]   ;;  %v6467_v43 = vld [vmem:[%s7189_s24 + $0xc40] ss:$16 sps:$4 sm:$0xff]  }
 0x277   : > { %4521 = vmatprep.subr.bf16.mxu1 %v6412_v44  ;;  %v6470_v44 = vld [vmem:[%s7189_s24 + $0xc48] ss:$16 sps:$4 sm:$0xff]  }
 0x279   : > { %4194 = vmatpush1.bf16.msra.mxu0 %v6407_v45  ;;  %v6475_v45 = vld [vmem:[%s7189_s24 + $0xc64] ss:$16 sps:$4 sm:$0xff]  }
 0x27a   : > { %4522 = vmatpush1.bf16.msra.mxu1 %v6410_v21  ;;  %4195 = vmatprep.subr.bf16.mxu0 %v6415_v0  ;;  %v6478_v21 = vld [vmem:[%s7189_s24 + $0xc6c] ss:$16 sps:$4 sm:$0xff]   ;;  %v6473_v0 = vld [vmem:[%s7189_s24 + $0xc60] ss:$16 sps:$4 sm:$0xff]  }
 0x27b   : > { %4523 = vmatprep.subr.bf16.mxu1 %v6418_v46  ;;  %v6476_v46 = vld [vmem:[%s7189_s24 + $0xc68] ss:$16 sps:$4 sm:$0xff]  }
 0x27d   : > { %4196 = vmatpush1.bf16.msra.mxu0 %v6413_v47  ;;  %v6481_v47 = vld [vmem:[%s7189_s24 + $0xc84] ss:$16 sps:$4 sm:$0xff]  }
 0x27e   : > { %4524 = vmatpush1.bf16.msra.mxu1 %v6416_v48  ;;  %4197 = vmatprep.subr.bf16.mxu0 %v6421_v50  ;;  %v6484_v48 = vld [vmem:[%s7189_s24 + $0xc8c] ss:$16 sps:$4 sm:$0xff]   ;;  %v6479_v50 = vld [vmem:[%s7189_s24 + $0xc80] ss:$16 sps:$4 sm:$0xff]  }
 0x27f   : > { %4525 = vmatprep.subr.bf16.mxu1 %v6424_v51  ;;  %v6482_v51 = vld [vmem:[%s7189_s24 + $0xc88] ss:$16 sps:$4 sm:$0xff]  }
 0x281   : > { %4198 = vmatpush1.bf16.msra.mxu0 %v6419_v52  ;;  %v6487_v52 = vld [vmem:[%s7189_s24 + $0xca4] ss:$16 sps:$4 sm:$0xff]  }
 0x282   : > { %4526 = vmatpush1.bf16.msra.mxu1 %v6422_v54  ;;  %4199 = vmatprep.subr.bf16.mxu0 %v6427_v16  ;;  %v6490_v54 = vld [vmem:[%s7189_s24 + $0xcac] ss:$16 sps:$4 sm:$0xff]   ;;  %v6485_v16 = vld [vmem:[%s7189_s24 + $0xca0] ss:$16 sps:$4 sm:$0xff]  }
 0x283   : > { %4527 = vmatprep.subr.bf16.mxu1 %v6430_v55  ;;  %v6488_v55 = vld [vmem:[%s7189_s24 + $0xca8] ss:$16 sps:$4 sm:$0xff]  }
 0x285   : > { %4200 = vmatpush1.bf16.msra.mxu0 %v6425_v56  ;;  %v6493_v56 = vld [vmem:[%s7189_s24 + $0xcc4] ss:$16 sps:$4 sm:$0xff]  }
 0x286   : > { %4528 = vmatpush1.bf16.msra.mxu1 %v6428_v57  ;;  %4201 = vmatprep.subr.bf16.mxu0 %v6433_v58  ;;  %v6496_v57 = vld [vmem:[%s7189_s24 + $0xccc] ss:$16 sps:$4 sm:$0xff]   ;;  %v6491_v58 = vld [vmem:[%s7189_s24 + $0xcc0] ss:$16 sps:$4 sm:$0xff]  }
 0x287   : > { %4529 = vmatprep.subr.bf16.mxu1 %v6436_v59  ;;  %v6494_v59 = vld [vmem:[%s7189_s24 + $0xcc8] ss:$16 sps:$4 sm:$0xff]  }
 0x289   : > { %4202 = vmatpush1.bf16.msra.mxu0 %v6431_v62  ;;  %v6502_v62 = vld [vmem:[%s7189_s24 + $0xcec] ss:$16 sps:$4 sm:$0xff]  }
 0x28a   : > { %4530 = vmatpush1.bf16.msra.mxu1 %v6434_v63  ;;  %4203 = vmatprep.subr.bf16.mxu0 %v6439_v1  ;;  %v6497_v63 = vld [vmem:[%s7189_s24 + $0xce0] ss:$16 sps:$4 sm:$0xff]   ;;  %v6500_v1 = vld [vmem:[%s7189_s24 + $0xce8] ss:$16 sps:$4 sm:$0xff]  }
 0x28b   : > { %4531 = vmatprep.subr.bf16.mxu1 %v6442_v14  ;;  %v6508_v14 = vld [vmem:[%s7189_s24 + $0xd0c] ss:$16 sps:$4 sm:$0xff]  }
 0x28d   : > { %4204 = vmatpush1.bf16.msra.mxu0 %v6437_v5  ;;  %v6506_v5 = vld [vmem:[%s7189_s24 + $0xd08] ss:$16 sps:$4 sm:$0xff]  }
 0x28e   : > { %4532 = vmatpush1.bf16.msra.mxu1 %v6440_v6  ;;  %4205 = vmatprep.subr.bf16.mxu0 %v6445_v8  ;;  %v6511_v6 = vld [vmem:[%s7189_s24 + $0xd24] ss:$16 sps:$4 sm:$0xff]   ;;  %v6514_v8 = vld [vmem:[%s7189_s24 + $0xd2c] ss:$16 sps:$4 sm:$0xff]  }
 0x28f   : > { %4533 = vmatprep.subr.bf16.mxu1 %v6448_v25  ;;  %v6512_v25 = vld [vmem:[%s7189_s24 + $0xd28] ss:$16 sps:$4 sm:$0xff]  }
 0x291   : > { %4206 = vmatpush1.bf16.msra.mxu0 %v6443_v20  ;;  %v6520_v20 = vld [vmem:[%s7189_s24 + $0xd4c] ss:$16 sps:$4 sm:$0xff]  }
 0x292   : > { %4534 = vmatpush1.bf16.msra.mxu1 %v6446_v18  ;;  %4207 = vmatprep.subr.bf16.mxu0 %v6451_v22  ;;  %v6515_v18 = vld [vmem:[%s7189_s24 + $0xd40] ss:$16 sps:$4 sm:$0xff]   ;;  %v6518_v22 = vld [vmem:[%s7189_s24 + $0xd48] ss:$16 sps:$4 sm:$0xff]  }
 0x293   : > { %4535 = vmatprep.subr.bf16.mxu1 %v6454_v24  ;;  %v6526_v24 = vld [vmem:[%s7189_s24 + $0xd6c] ss:$16 sps:$4 sm:$0xff]  }
 0x295   : > { %4208 = vmatpush1.bf16.msra.mxu0 %v6449_v27  ;;  %v6529_v27 = vld [vmem:[%s7189_s24 + $0xd84] ss:$16 sps:$4 sm:$0xff]  }
 0x296   : > { %4536 = vmatpush1.bf16.msra.mxu1 %v6452_v28  ;;  %4218 = vmatprep.subr.bf16.mxu0 %v6457_v32  ;;  %v637_v28 = vrot.slane %v7749_v60, %v7276_v10  ;;  %v6532_v32 = vld [vmem:[%s7189_s24 + $0xd8c] ss:$16 sps:$4 sm:$0xff]  }
 0x297   : > { %4546 = vmatprep.subr.bf16.mxu1 %v6460_v33  ;;  %v473_v33 = vrot.slane %v7749_v60, %v7272_v7  ;;  %v6536_v60 = vld [vmem:[%s7189_s24 + $0xda8] ss:$16 sps:$4 sm:$0xff]  }
 0x298   : > { %4210 = vmatmul.mubr.bf16.vlgmr.msra.gmra.mrb[0].mxu0 %v872_v15 }
 0x299   : > { %4538 = vmatmul.mubr.bf16.vlgmr.msra.gmra.mrb[0].mxu1 %v872_v15  ;;  %4219 = vmatpush1.bf16.msra.mxu0 %v6455_v35  ;;  %v6530_v35 = vld [vmem:[%s7189_s24 + $0xd88] ss:$16 sps:$4 sm:$0xff]   ;;  %v6535_v15 = vld [vmem:[%s7189_s24 + $0xda4] ss:$16 sps:$4 sm:$0xff]  }
 0x29a   : > { %4250 = vmatprep.mubr.bf16.mxu0 %v875_v38  ;;  %4547 = vmatpush1.bf16.msra.mxu1 %v6458_v36  ;;  %v717_v36 = vrot.slane %v637_v28, %v7276_v10  ;;  %v6604_v28 = vld [vmem:[%s7189_s24 + $0xf0c] ss:$16 sps:$4 sm:$0xff]  }
 0x29b   : > { %4578 = vmatprep.mubr.bf16.mxu1 %v875_v38  ;;  %4220 = vmatprep.subr.bf16.mxu0 %v6463_v37  ;;  %v6538_v37 = vld [vmem:[%s7189_s24 + $0xdac] ss:$16 sps:$4 sm:$0xff]   ;;  %v553_v38 = vrot.slane %v473_v33, %v7272_v7  ;;  %v6602_v33 = vld [vmem:[%s7189_s24 + $0xf08] ss:$16 sps:$4 sm:$0xff]  }
 0x29c   : > { %4548 = vmatprep.subr.bf16.mxu1 %v6466_v39  ;;  %v6533_v39 = vld [vmem:[%s7189_s24 + $0xda0] ss:$16 sps:$4 sm:$0xff]  }
 0x29d   : > { %4221 = vmatpush1.bf16.msra.mxu0 %v6461_v40  ;;  %v6541_v40 = vld [vmem:[%s7189_s24 + $0xdc4] ss:$16 sps:$4 sm:$0xff]  }
 0x29e   : > { %4549 = vmatpush1.bf16.msra.mxu1 %v6464_v41  ;;  %4222 = vmatprep.subr.bf16.mxu0 %v6469_v29  ;;  %v742_v41 = vmul.f32 %v717_v36, %v7334_v49  ;;  %v6544_v29 = vld [vmem:[%s7189_s24 + $0xdcc] ss:$16 sps:$4 sm:$0xff]   ;;  %v6608_v36 = vld [vmem:[%s7189_s24 + $0xf28] ss:$16 sps:$4 sm:$0xff]  }
 0x29f   : > { %4550 = vmatprep.subr.bf16.mxu1 %v6472_v42  ;;  %v578_v42 = vmul.f32 %v553_v38, %v7308_v30  ;;  %v6550_v49 = vld [vmem:[%s7189_s24 + $0xdec] ss:$16 sps:$4 sm:$0xff]   ;;  %v6548_v30 = vld [vmem:[%s7189_s24 + $0xde8] ss:$16 sps:$4 sm:$0xff]  }
 0x2a0   : > { %v6616_v38 = vld [vmem:[%s7189_s24 + $0xf4c] ss:$16 sps:$4 sm:$0xff]  }
 0x2a1   : > { %4223 = vmatpush1.bf16.msra.mxu0 %v6467_v43  ;;  %v6539_v43 = vld [vmem:[%s7189_s24 + $0xdc0] ss:$16 sps:$4 sm:$0xff]  }
 0x2a2   : > { %4551 = vmatpush1.bf16.msra.mxu1 %v6470_v44  ;;  %4224 = vmatprep.subr.bf16.mxu0 %v6475_v45  ;;  %v6542_v44 = vld [vmem:[%s7189_s24 + $0xdc8] ss:$16 sps:$4 sm:$0xff]   ;;  %v6547_v45 = vld [vmem:[%s7189_s24 + $0xde4] ss:$16 sps:$4 sm:$0xff]  }
 0x2a3   : > { %4552 = vmatprep.subr.bf16.mxu1 %v6478_v21  ;;  %v758_v21 = vadd.f32 %v742_v41, %v578_v42  ;;  %v6622_v41 = vld [vmem:[%s7189_s24 + $0xf6c] ss:$16 sps:$4 sm:$0xff]   ;;  %v6620_v42 = vld [vmem:[%s7189_s24 + $0xf68] ss:$16 sps:$4 sm:$0xff]  }
 0x2a5   : > { %4225 = vmatpush1.bf16.msra.mxu0 %v6473_v0  ;;  %v817_v0 = vrot.slane %v7615_v31, %v7280_v12  ;;  %v6554_v31 = vld [vmem:[%s7189_s24 + $0xe08] ss:$16 sps:$4 sm:$0xff]  }
 0x2a6   : > { %4553 = vmatpush1.bf16.msra.mxu1 %v6476_v46  ;;  %4226 = vmatprep.subr.bf16.mxu0 %v6481_v47  ;;  %v6545_v46 = vld [vmem:[%s7189_s24 + $0xde0] ss:$16 sps:$4 sm:$0xff]  }
 0x2a7   : > { %4554 = vmatprep.subr.bf16.mxu1 %v6484_v48  ;;  %v858_v47 = vadd.f32 %v817_v0, %v758_v21  ;;  %v6553_v48 = vld [vmem:[%s7189_s24 + $0xe04] ss:$16 sps:$4 sm:$0xff]   ;;  %v6626_v21 = vld [vmem:[%s7189_s24 + $0xf88] ss:$16 sps:$4 sm:$0xff]  }
 0x2a8   : > { %v6631_v0 = vld [vmem:[%s7189_s24 + $0xfa4] ss:$16 sps:$4 sm:$0xff]  }
 0x2a9   : > { %4227 = vmatpush1.bf16.msra.mxu0 %v6479_v50  ;;  %v6556_v50 = vld [vmem:[%s7189_s24 + $0xe0c] ss:$16 sps:$4 sm:$0xff]   ;;  %v874_v12 = vpack.c.bf16 %v858_v47, %v858_v47  ;;  %v6637_v47 = vld [vmem:[%s7189_s24 + $0xfc4] ss:$16 sps:$4 sm:$0xff]  }
 0x2aa   : > { %4555 = vmatpush1.bf16.msra.mxu1 %v6482_v51  ;;  %4228 = vmatprep.subr.bf16.mxu0 %v6487_v52  ;;  %v6551_v51 = vld [vmem:[%s7189_s24 + $0xe00] ss:$16 sps:$4 sm:$0xff]   ;;  %v6559_v52 = vld [vmem:[%s7189_s24 + $0xe24] ss:$16 sps:$4 sm:$0xff]  }
 0x2ab   : > { %4556 = vmatprep.subr.bf16.mxu1 %v6490_v54  ;;  %v877_v54 = vpack.c.bf16 %v7499_v4, %v7499_v4  ;;  %v6563_v4 = vld [vmem:[%s7189_s24 + $0xe40] ss:$16 sps:$4 sm:$0xff]  }
 0x2ad   : > { %4229 = vmatpush1.bf16.msra.mxu0 %v6485_v16  ;;  %v6562_v16 = vld [vmem:[%s7189_s24 + $0xe2c] ss:$16 sps:$4 sm:$0xff]  }
 0x2ae   : > { %4557 = vmatpush1.bf16.msra.mxu1 %v6488_v55  ;;  %4230 = vmatprep.subr.bf16.mxu0 %v6493_v56  ;;  %v6557_v55 = vld [vmem:[%s7189_s24 + $0xe20] ss:$16 sps:$4 sm:$0xff]   ;;  %v6560_v56 = vld [vmem:[%s7189_s24 + $0xe28] ss:$16 sps:$4 sm:$0xff]  }
 0x2af   : > { %4558 = vmatprep.subr.bf16.mxu1 %v6496_v57  ;;  %v6565_v57 = vld [vmem:[%s7189_s24 + $0xe44] ss:$16 sps:$4 sm:$0xff]  }
 0x2b1   : > { %4231 = vmatpush1.bf16.msra.mxu0 %v6491_v58  ;;  %v6568_v58 = vld [vmem:[%s7189_s24 + $0xe4c] ss:$16 sps:$4 sm:$0xff]  }
 0x2b2   : > { %4559 = vmatpush1.bf16.msra.mxu1 %v6494_v59  ;;  %4232 = vmatprep.subr.bf16.mxu0 %v6499_v61  ;;  %v6566_v59 = vld [vmem:[%s7189_s24 + $0xe48] ss:$16 sps:$4 sm:$0xff]   ;;  %v6571_v61 = vld [vmem:[%s7189_s24 + $0xe64] ss:$16 sps:$4 sm:$0xff]  }
 0x2b3   : > { %4560 = vmatprep.subr.bf16.mxu1 %v6502_v62  ;;  %v6574_v62 = vld [vmem:[%s7189_s24 + $0xe6c] ss:$16 sps:$4 sm:$0xff]  }
 0x2b5   : > { %4233 = vmatpush1.bf16.msra.mxu0 %v6497_v63  ;;  %v6569_v63 = vld [vmem:[%s7189_s24 + $0xe60] ss:$16 sps:$4 sm:$0xff]  }
 0x2b6   : > { %4561 = vmatpush1.bf16.msra.mxu1 %v6500_v1  ;;  %4234 = vmatprep.subr.bf16.mxu0 %v6505_v2  ;;  %v6572_v1 = vld [vmem:[%s7189_s24 + $0xe68] ss:$16 sps:$4 sm:$0xff]   ;;  %v6577_v2 = vld [vmem:[%s7189_s24 + $0xe84] ss:$16 sps:$4 sm:$0xff]  }
 0x2b7   : > { %4562 = vmatprep.subr.bf16.mxu1 %v6508_v14  ;;  %v6580_v14 = vld [vmem:[%s7189_s24 + $0xe8c] ss:$16 sps:$4 sm:$0xff]  }
 0x2b9   : > { %4235 = vmatpush1.bf16.msra.mxu0 %v6503_v3  ;;  %v6575_v3 = vld [vmem:[%s7189_s24 + $0xe80] ss:$16 sps:$4 sm:$0xff]  }
 0x2ba   : > { %4563 = vmatpush1.bf16.msra.mxu1 %v6506_v5  ;;  %4236 = vmatprep.subr.bf16.mxu0 %v6511_v6  ;;  %v6578_v5 = vld [vmem:[%s7189_s24 + $0xe88] ss:$16 sps:$4 sm:$0xff]   ;;  %v6583_v6 = vld [vmem:[%s7189_s24 + $0xea4] ss:$16 sps:$4 sm:$0xff]  }
 0x2bb   : > { %4564 = vmatprep.subr.bf16.mxu1 %v6514_v8  ;;  %v6586_v8 = vld [vmem:[%s7189_s24 + $0xeac] ss:$16 sps:$4 sm:$0xff]  }
 0x2bd   : > { %4237 = vmatpush1.bf16.msra.mxu0 %v6509_v11  ;;  %v6581_v11 = vld [vmem:[%s7189_s24 + $0xea0] ss:$16 sps:$4 sm:$0xff]  }
 0x2be   : > { %4565 = vmatpush1.bf16.msra.mxu1 %v6512_v25  ;;  %4238 = vmatprep.subr.bf16.mxu0 %v6517_v53  ;;  %v6584_v25 = vld [vmem:[%s7189_s24 + $0xea8] ss:$16 sps:$4 sm:$0xff]   ;;  %v6589_v53 = vld [vmem:[%s7189_s24 + $0xec4] ss:$16 sps:$4 sm:$0xff]  }
 0x2bf   : > { %4566 = vmatprep.subr.bf16.mxu1 %v6520_v20  ;;  %v6592_v20 = vld [vmem:[%s7189_s24 + $0xecc] ss:$16 sps:$4 sm:$0xff]  }
 0x2c1   : > { %4239 = vmatpush1.bf16.msra.mxu0 %v6515_v18  ;;  %v6587_v18 = vld [vmem:[%s7189_s24 + $0xec0] ss:$16 sps:$4 sm:$0xff]  }
 0x2c2   : > { %4567 = vmatpush1.bf16.msra.mxu1 %v6518_v22  ;;  %4240 = vmatprep.subr.bf16.mxu0 %v6523_v23  ;;  %v6590_v22 = vld [vmem:[%s7189_s24 + $0xec8] ss:$16 sps:$4 sm:$0xff]   ;;  %v6595_v23 = vld [vmem:[%s7189_s24 + $0xee4] ss:$16 sps:$4 sm:$0xff]  }
 0x2c3   : > { %4568 = vmatprep.subr.bf16.mxu1 %v6526_v24  ;;  %v6598_v24 = vld [vmem:[%s7189_s24 + $0xeec] ss:$16 sps:$4 sm:$0xff]  }
 0x2c5   : > { %4241 = vmatpush1.bf16.msra.mxu0 %v6521_v26  ;;  %v6593_v26 = vld [vmem:[%s7189_s24 + $0xee0] ss:$16 sps:$4 sm:$0xff]  }
 0x2c6   : > { %4569 = vmatpush1.bf16.msra.mxu1 %v6524_v17  ;;  %4242 = vmatprep.subr.bf16.mxu0 %v6529_v27  ;;  %v6596_v17 = vld [vmem:[%s7189_s24 + $0xee8] ss:$16 sps:$4 sm:$0xff]   ;;  %v6601_v27 = vld [vmem:[%s7189_s24 + $0xf04] ss:$16 sps:$4 sm:$0xff]  }
 0x2c7   : > { %4570 = vmatprep.subr.bf16.mxu1 %v6532_v32  ;;  %v6599_v32 = vld [vmem:[%s7189_s24 + $0xf00] ss:$16 sps:$4 sm:$0xff]  }
 0x2c9   : > { %4243 = vmatpush1.bf16.msra.mxu0 %v6527_v34  ;;  %v6607_v34 = vld [vmem:[%s7189_s24 + $0xf24] ss:$16 sps:$4 sm:$0xff]  }
 0x2ca   : > { %4571 = vmatpush1.bf16.msra.mxu1 %v6530_v35  ;;  %4244 = vmatprep.subr.bf16.mxu0 %v6535_v15  ;;  %v6610_v35 = vld [vmem:[%s7189_s24 + $0xf2c] ss:$16 sps:$4 sm:$0xff]   ;;  %v6605_v15 = vld [vmem:[%s7189_s24 + $0xf20] ss:$16 sps:$4 sm:$0xff]  }
 0x2cb   : > { %4572 = vmatprep.subr.bf16.mxu1 %v6538_v37  ;;  %v6613_v37 = vld [vmem:[%s7189_s24 + $0xf44] ss:$16 sps:$4 sm:$0xff]  }
 0x2cd   : > { %4245 = vmatpush1.bf16.msra.mxu0 %v6533_v39  ;;  %v6611_v39 = vld [vmem:[%s7189_s24 + $0xf40] ss:$16 sps:$4 sm:$0xff]  }
 0x2ce   : > { %4573 = vmatpush1.bf16.msra.mxu1 %v6536_v60  ;;  %4246 = vmatprep.subr.bf16.mxu0 %v6541_v40  ;;  %v6614_v60 = vld [vmem:[%s7189_s24 + $0xf48] ss:$16 sps:$4 sm:$0xff]   ;;  %v6619_v40 = vld [vmem:[%s7189_s24 + $0xf64] ss:$16 sps:$4 sm:$0xff]  }
 0x2cf   : > { %4574 = vmatprep.subr.bf16.mxu1 %v6544_v29  ;;  %v6617_v29 = vld [vmem:[%s7189_s24 + $0xf60] ss:$16 sps:$4 sm:$0xff]  }
 0x2d1   : > { %4247 = vmatpush1.bf16.msra.mxu0 %v6539_v43  ;;  %v6625_v43 = vld [vmem:[%s7189_s24 + $0xf84] ss:$16 sps:$4 sm:$0xff]  }
 0x2d2   : > { %4575 = vmatpush1.bf16.msra.mxu1 %v6542_v44  ;;  %4248 = vmatprep.subr.bf16.mxu0 %v6547_v45  ;;  %v6628_v44 = vld [vmem:[%s7189_s24 + $0xf8c] ss:$16 sps:$4 sm:$0xff]   ;;  %v6623_v45 = vld [vmem:[%s7189_s24 + $0xf80] ss:$16 sps:$4 sm:$0xff]  }
 0x2d3   : > { %4576 = vmatprep.subr.bf16.mxu1 %v6550_v49  ;;  %v6634_v49 = vld [vmem:[%s7189_s24 + $0xfac] ss:$16 sps:$4 sm:$0xff]  }
 0x2d5   : > { %4249 = vmatpush1.bf16.msra.mxu0 %v6545_v46  ;;  %v6629_v46 = vld [vmem:[%s7189_s24 + $0xfa0] ss:$16 sps:$4 sm:$0xff]  }
 0x2d6   : > { %4577 = vmatpush1.bf16.msra.mxu1 %v6548_v30  ;;  %4259 = vmatprep.subr.bf16.mxu0 %v6553_v48  ;;  %v6632_v30 = vld [vmem:[%s7189_s24 + $0xfa8] ss:$16 sps:$4 sm:$0xff]   ;;  %v6640_v48 = vld [vmem:[%s7189_s24 + $0xfcc] ss:$16 sps:$4 sm:$0xff]  }
 0x2d7   : > { %4587 = vmatprep.subr.bf16.mxu1 %v6556_v50  ;;  %v6635_v50 = vld [vmem:[%s7189_s24 + $0xfc0] ss:$16 sps:$4 sm:$0xff]  }
 0x2d8   : > { %4251 = vmatmul.mubr.bf16.vlgmr.msra.gmra.mrb[0].mxu0 %v874_v12 }
 0x2d9   : > { %4579 = vmatmul.mubr.bf16.vlgmr.msra.gmra.mrb[0].mxu1 %v874_v12  ;;  %4260 = vmatpush1.bf16.msra.mxu0 %v6551_v51  ;;  %v6638_v51 = vld [vmem:[%s7189_s24 + $0xfc8] ss:$16 sps:$4 sm:$0xff]   ;;  %v6643_v12 = vld [vmem:[%s7189_s24 + $0xfe4] ss:$16 sps:$4 sm:$0xff]  }
 0x2da   : > { %4291 = vmatprep.mubr.bf16.mxu0 %v877_v54  ;;  %4588 = vmatpush1.bf16.msra.mxu1 %v6554_v31  ;;  %v6646_v31 = vld [vmem:[%s7189_s24 + $0xfec] ss:$16 sps:$4 sm:$0xff]  }
 0x2db   : > { %4619 = vmatprep.mubr.bf16.mxu1 %v877_v54  ;;  %4261 = vmatprep.subr.bf16.mxu0 %v6559_v52  ;;  %v6641_v52 = vld [vmem:[%s7189_s24 + $0xfe0] ss:$16 sps:$4 sm:$0xff]   ;;  %v6644_v54 = vld [vmem:[%s7189_s24 + $0xfe8] ss:$16 sps:$4 sm:$0xff]  }
 0x2dc   : > { %4589 = vmatprep.subr.bf16.mxu1 %v6562_v16  ;;  %v6647_v16 = vld [vmem:[%s7197_s20 + $0x40] sm:$0xff]  }
 0x2dd   : > { %4262 = vmatpush1.bf16.msra.mxu0 %v6557_v55  ;;  %v6648_v55 = vld [vmem:[%s7197_s20 + $0xc0] sm:$0xff]  }
 0x2de   : > { %4590 = vmatpush1.bf16.msra.mxu1 %v6560_v56  ;;  %4263 = vmatprep.subr.bf16.mxu0 %v6565_v57  ;;  %v6649_v56 = vld [vmem:[%s7197_s20] sm:$0xff]   ;;  %v876_v57 = vpack.c.bf16 %v7503_v19, %v7503_v19  ;;  %v6656_v19 = vld [vmem:[%s7197_s20 + $0xd0] sm:$0xff]  }
 0x2df   : > { %4591 = vmatprep.subr.bf16.mxu1 %v6568_v58  ;;  %v6650_v58 = vld [vmem:[%s7197_s20 + $0x80] sm:$0xff]  }
 0x2e1   : > { %4264 = vmatpush1.bf16.msra.mxu0 %v6563_v4  ;;  %v6651_v4 = vld [vmem:[%s7197_s20 + $0x48] sm:$0xff]  }
 0x2e2   : > { %4592 = vmatpush1.bf16.msra.mxu1 %v6566_v59  ;;  %4265 = vmatprep.subr.bf16.mxu0 %v6571_v61  ;;  %v6652_v59 = vld [vmem:[%s7197_s20 + $0xc8] sm:$0xff]  }
 0x2e3   : > { %4593 = vmatprep.subr.bf16.mxu1 %v6574_v62  ;;  %v6653_v61 = vld [vmem:[%s7197_s20 + $0x8] sm:$0xff]  }
 0x2e4   : > { %v6654_v62 = vld [vmem:[%s7197_s20 + $0x88] sm:$0xff]  }
 0x2e5   : > { %4266 = vmatpush1.bf16.msra.mxu0 %v6569_v63  ;;  %v6655_v63 = vld [vmem:[%s7197_s20 + $0x50] sm:$0xff]  }
 0x2e6   : > { %4594 = vmatpush1.bf16.msra.mxu1 %v6572_v1  ;;  %4267 = vmatprep.subr.bf16.mxu0 %v6577_v2  ;;  %v6657_v1 = vld [vmem:[%s7197_s20 + $0x10] sm:$0xff]  }
 0x2e7   : > { %4595 = vmatprep.subr.bf16.mxu1 %v6580_v14  ;;  %v6658_v2 = vld [vmem:[%s7197_s20 + $0x90] sm:$0xff]   ;;  %v6659_v14 = vld [vmem:[%s7197_s20 + $0x58] sm:$0xff]  }
 0x2e9   : > { %4268 = vmatpush1.bf16.msra.mxu0 %v6575_v3  ;;  %v6660_v3 = vld [vmem:[%s7197_s20 + $0xd8] sm:$0xff]  }
 0x2ea   : > { %4596 = vmatpush1.bf16.msra.mxu1 %v6578_v5  ;;  %4269 = vmatprep.subr.bf16.mxu0 %v6583_v6  ;;  %v6661_v5 = vld [vmem:[%s7197_s20 + $0x18] sm:$0xff]  }
 0x2eb   : > { %4597 = vmatprep.subr.bf16.mxu1 %v6586_v8  ;;  %v6662_v6 = vld [vmem:[%s7197_s20 + $0x98] sm:$0xff]   ;;  %v6663_v8 = vld [vmem:[%s7197_s20 + $0x60] sm:$0xff]  }
 0x2ed   : > { %4270 = vmatpush1.bf16.msra.mxu0 %v6581_v11  ;;  %v6664_v11 = vld [vmem:[%s7197_s20 + $0xe0] sm:$0xff]  }
 0x2ee   : > { %4598 = vmatpush1.bf16.msra.mxu1 %v6584_v25  ;;  %4271 = vmatprep.subr.bf16.mxu0 %v6589_v53  ;;  %v6665_v25 = vld [vmem:[%s7197_s20 + $0x20] sm:$0xff]  }
 0x2ef   : > { %4599 = vmatprep.subr.bf16.mxu1 %v6592_v20  ;;  %v6666_v53 = vld [vmem:[%s7197_s20 + $0xa0] sm:$0xff]   ;;  %v6667_v20 = vld [vmem:[%s7197_s20 + $0x68] sm:$0xff]  }
 0x2f1   : > { %4272 = vmatpush1.bf16.msra.mxu0 %v6587_v18  ;;  %v6668_v18 = vld [vmem:[%s7197_s20 + $0xe8] sm:$0xff]  }
 0x2f2   : > { %4600 = vmatpush1.bf16.msra.mxu1 %v6590_v22  ;;  %4273 = vmatprep.subr.bf16.mxu0 %v6595_v23  ;;  %v6669_v22 = vld [vmem:[%s7197_s20 + $0x28] sm:$0xff]  }
 0x2f3   : > { %4601 = vmatprep.subr.bf16.mxu1 %v6598_v24  ;;  %v6670_v23 = vld [vmem:[%s7197_s20 + $0xa8] sm:$0xff]   ;;  %v6671_v24 = vld [vmem:[%s7197_s20 + $0x70] sm:$0xff]  }
 0x2f5   : > { %4274 = vmatpush1.bf16.msra.mxu0 %v6593_v26  ;;  %v6672_v26 = vld [vmem:[%s7197_s20 + $0xf0] sm:$0xff]  }
 0x2f6   : > { %4602 = vmatpush1.bf16.msra.mxu1 %v6596_v17  ;;  %4275 = vmatprep.subr.bf16.mxu0 %v6601_v27  ;;  %v6673_v17 = vld [vmem:[%s7197_s20 + $0x30] sm:$0xff]  }
 0x2f7   : > { %4603 = vmatprep.subr.bf16.mxu1 %v6604_v28  ;;  %v6674_v27 = vld [vmem:[%s7197_s20 + $0xb0] sm:$0xff]   ;;  %v6675_v28 = vld [vmem:[%s7197_s20 + $0x78] sm:$0xff]  }
 0x2f9   : > { %4276 = vmatpush1.bf16.msra.mxu0 %v6599_v32  ;;  %v6676_v32 = vld [vmem:[%s7197_s20 + $0xf8] sm:$0xff]  }
 0x2fa   : > { %4604 = vmatpush1.bf16.msra.mxu1 %v6602_v33  ;;  %4277 = vmatprep.subr.bf16.mxu0 %v6607_v34  ;;  %v6677_v33 = vld [vmem:[%s7197_s20 + $0x38] sm:$0xff]  }
 0x2fb   : > { %4605 = vmatprep.subr.bf16.mxu1 %v6610_v35  ;;  %v6678_v34 = vld [vmem:[%s7197_s20 + $0xb8] sm:$0xff]  }
 0x2fc   : > { %v1390_v35 = vld [vmem:[%s7195_s7] sm:$0xf] }
 0x2fd   : > { %4278 = vmatpush1.bf16.msra.mxu0 %v6605_v15  ;;  %v1395_v15 = vrot.slane %v1390_v35, %v7272_v7 }
 0x2fe   : > { %4606 = vmatpush1.bf16.msra.mxu1 %v6608_v36  ;;  %4279 = vmatprep.subr.bf16.mxu0 %v6613_v37  ;;  %v1403_v36 = vrot.slane %v1390_v35, %v7274_v9  ;;  %v1399_v37 = vrot.slane %v1390_v35, %v7276_v10 }
 0x2ff   : > { %4607 = vmatprep.subr.bf16.mxu1 %v6616_v38  ;;  %v1407_v38 = vrot.slane %v1390_v35, %v7282_v13  ;;  %v4696_v13 = vld [vmem:[#allocation9] sm:$0x1] }
 0x301   : > { %4280 = vmatpush1.bf16.msra.mxu0 %v6611_v39 }
 0x302   : > { %4608 = vmatpush1.bf16.msra.mxu1 %v6614_v60  ;;  %4281 = vmatprep.subr.bf16.mxu0 %v6619_v40 }
 0x303   : > { %4609 = vmatprep.subr.bf16.mxu1 %v6622_v41 }
 0x305   : > { %4282 = vmatpush1.bf16.msra.mxu0 %v6617_v29 }
 0x306   : > { %4610 = vmatpush1.bf16.msra.mxu1 %v6620_v42  ;;  %4283 = vmatprep.subr.bf16.mxu0 %v6625_v43 }
 0x307   : > { %4611 = vmatprep.subr.bf16.mxu1 %v6628_v44 }
 0x309   : > { %4284 = vmatpush1.bf16.msra.mxu0 %v6623_v45 }
 0x30a   : > { %4612 = vmatpush1.bf16.msra.mxu1 %v6626_v21  ;;  %4285 = vmatprep.subr.bf16.mxu0 %v6631_v0 }
 0x30b   : > { %4613 = vmatprep.subr.bf16.mxu1 %v6634_v49 }
 0x30d   : > { %4286 = vmatpush1.bf16.msra.mxu0 %v6629_v46 }
 0x30e   : > { %4614 = vmatpush1.bf16.msra.mxu1 %v6632_v30  ;;  %4287 = vmatprep.subr.bf16.mxu0 %v6637_v47  ;;  %v4700_v47 = vstv %s4699_s15 }
 0x30f   : > { %4615 = vmatprep.subr.bf16.mxu1 %v6640_v48  ;;  %v4701_v48 = vmul.f32 %v4700_v47, %v4696_v13 }
 0x311   : > { %4288 = vmatpush1.bf16.msra.mxu0 %v6635_v50 }
 0x312   : > { %4616 = vmatpush1.bf16.msra.mxu1 %v6638_v51  ;;  %4289 = vmatprep.subr.bf16.mxu0 %v6643_v12  ;;  %v4706_v51 = vrot.slane %v4701_v48, %v7272_v7 }
 0x313   : > { %4617 = vmatprep.subr.bf16.mxu1 %v6646_v31 }
 0x315   : > { %4290 = vmatpush1.bf16.msra.mxu0 %v6641_v52 }
 0x316   : > { %4618 = vmatpush1.bf16.msra.mxu1 %v6644_v54  ;;  %5686 = vmatprep.subr.bf16.mxu0 %v6647_v16 }
 0x317   : > { %5708 = vmatprep.subr.bf16.mxu1 %v6648_v55 }
 0x318   : > { %4292 = vmatmul.mubr.bf16.vlgmr.msra.gmra.mrb[0].mxu0 %v876_v57 }
 0x319   : > { %4620 = vmatmul.mubr.bf16.vlgmr.msra.gmra.mrb[0].mxu1 %v876_v57  ;;  %5687 = vmatpush3.bf16.msra.mxu0 %v6649_v56 }
 0x31a   : > { %5709 = vmatpush3.bf16.msra.mxu1 %v6650_v58  ;;  %5688 = vmatprep.subr.bf16.mxu0 %v6651_v4 }
 0x31b   : > { %5710 = vmatprep.subr.bf16.mxu1 %v6652_v59 }
 0x31d   : > { %5689 = vmatpush3.bf16.msra.mxu0 %v6653_v61 }
 0x31e   : > { %5711 = vmatpush3.bf16.msra.mxu1 %v6654_v62  ;;  %5690 = vmatprep.subr.bf16.mxu0 %v6655_v63 }
 0x31f   : > { %5712 = vmatprep.subr.bf16.mxu1 %v6656_v19 }
 0x321   : > { %5691 = vmatpush3.bf16.msra.mxu0 %v6657_v1 }
 0x322   : > { %5713 = vmatpush3.bf16.msra.mxu1 %v6658_v2  ;;  %5692 = vmatprep.subr.bf16.mxu0 %v6659_v14 }
 0x323   : > { %5714 = vmatprep.subr.bf16.mxu1 %v6660_v3 }
 0x325   : > { %5693 = vmatpush3.bf16.msra.mxu0 %v6661_v5 }
 0x326   : > { %5715 = vmatpush3.bf16.msra.mxu1 %v6662_v6  ;;  %5694 = vmatprep.subr.bf16.mxu0 %v6663_v8 }
 0x327   : > { %5716 = vmatprep.subr.bf16.mxu1 %v6664_v11 }
 0x329   : > { %5695 = vmatpush3.bf16.msra.mxu0 %v6665_v25 }
 0x32a   : > { %5717 = vmatpush3.bf16.msra.mxu1 %v6666_v53  ;;  %5696 = vmatprep.subr.bf16.mxu0 %v6667_v20 }
 0x32b   : > { %5718 = vmatprep.subr.bf16.mxu1 %v6668_v18 }
 0x32d   : > { %5697 = vmatpush3.bf16.msra.mxu0 %v6669_v22 }
 0x32e   : > { %5719 = vmatpush3.bf16.msra.mxu1 %v6670_v23  ;;  %5698 = vmatprep.subr.bf16.mxu0 %v6671_v24 }
 0x32f   : > { %5720 = vmatprep.subr.bf16.mxu1 %v6672_v26 }
 0x331   : > { %5699 = vmatpush3.bf16.msra.mxu0 %v6673_v17 }
 0x332   : > { %5721 = vmatpush3.bf16.msra.mxu1 %v6674_v27  ;;  %5700 = vmatprep.subr.bf16.mxu0 %v6675_v28 }
 0x333   : > { %5722 = vmatprep.subr.bf16.mxu1 %v6676_v32 }
 0x335   : > { %5701 = vmatpush3.bf16.msra.mxu0 %v6677_v33 }
 0x336   : > { %5723 = vmatpush3.bf16.msra.mxu1 %v6678_v34 }
 0x3eb   : > { %v4293_v39 = vpop.f32.mrb[0].mxu0 }
 0x3ec   : > { %v5730_v60 = vadd.f32 %v4293_v39, %v1395_v15  ;;  %v4621_v40 = vpop.f32.mrb[0].mxu1  ;;  %v4295_v41 = vpop.f32.mrb[1].mxu0 }
 0x3ed   : > { %v5732_v29 = vadd.f32 %v4621_v40, %v1403_v36  ;;  %v5731_v42 = vadd.f32 %v4295_v41, %v1399_v37  ;;  %v4623_v43 = vpop.f32.mrb[1].mxu1  ;;  %v4297_v44 = vpop.f32.mrb[2].mxu0 }
 0x3ee   : > { %v5733_v45 = vadd.f32 %v4623_v43, %v1407_v38  ;;  %v4625_v21 = vpop.f32.mrb[2].mxu1  ;;  %v4298_v0 = vpop.f32.mrb[3].mxu0  ;;  %v4628_v46 = vpack.c.bf16 %v5730_v60, %v5730_v60 }
 0x3ef   : > { %v4629_v49 = vpack.c.bf16 %v5731_v42, %v5731_v42  ;;  %v4626_v9 = vpop.f32.mrb[3].mxu1  ;;  %v4630_v30 = vpack.c.bf16 %v5732_v29, %v5732_v29 }
 0x3f0   : > { %v4631_v10 = vpack.c.bf16 %v5733_v45, %v5733_v45 }
 0x3f1   : > { %4932 = vmatprep.mubr.bf16.mxu0 %v4629_v49 }
 0x3f2   : > { %4972 = vmatprep.mubr.bf16.mxu1 %v4631_v10  ;;  %4933 = vmatmul.mubr.bf16.vlgmr.msra.gmra.mrb[4].mxu0 %v4628_v46 }
 0x3f3   : > { %4973 = vmatmul.mubr.bf16.vlgmr.msra.gmra.mrb[4].mxu1 %v4630_v30 }
 0x4c5   : > { %v5702_v50 = vpop.f32.mrb[4].mxu0 }
 0x4c6   : > { %v5724_v12 = vpop.f32.mrb[4].mxu1  ;;  %v5703_v31 = vpop.f32.mrb[5].mxu0 }
 0x4c7   : > { %v5704_v52 = vadd.f32 %v5703_v31, %v5702_v50  ;;  %v5725_v54 = vpop.f32.mrb[5].mxu1  ;;  %v5705_v16 = vpop.f32.mrb[6].mxu0 }
 0x4c8   : > { %v5726_v55 = vadd.f32 %v5725_v54, %v5724_v12  ;;  %v5727_v56 = vpop.f32.mrb[6].mxu1  ;;  %v5706_v57 = vpop.f32.mrb[7].mxu0 }
 0x4c9   : > { %v4935_v58 = vadd.f32 %v5704_v52, %v4706_v51  ;;  %v5728_v4 = vpop.f32.mrb[7].mxu1 }
 0x4cb   : > { %v4975_v59 = vadd.f32 %v5726_v55, %v4935_v58 }
 0x4cd   : > { %4980 = vst [vmem:[%s406_s8] sm:$0xff] %v4975_v59 }
 0x4ce PF: > { %s8030_s27 = sld [smem:[#allocation15_spill]]  ;;  %s8031_s29 = sld [smem:[#allocation14_spill]] }
 0x4cf   : > { %s8032_s26 = sld [smem:[#allocation16_spill]]  ;;  %s8033_s24 = smov %s6896_s25 }
 0x4d4   : > { %p16_p7 = scmp.ge.s32.totalorder %s8030_s27, 6   ;;  %s8034_s25 = smov %s8031_s29 }
 0x4d6   :  { %18 = sbr.rel (!%p16_p7) target bundleno = 7 (0x7), region = 121 }
 0x4dd   :  { %5000 = vsyncpa [#allocation3], 1 }
 0x4de   :  { %5002 = vsyncpa [#allocation3 + $0x1], 1 }
 0x4df   :  { %5003 = vsyncpa [#allocation5], 1 }

</bundles_post_ra>
